<compile_context>
chip_gen: v6e
topology: v6e:2x2x1
jax: 0.10.0
libtpu: 0.0.40
codegen_flags: <defaults>
</compile_context>

<pallas_src>
import jax
import jax.numpy as jnp
from jax.experimental import pallas as pl
from jax.experimental.pallas import tpu as pltpu  # noqa: F401  (kept for TPU backend)

BN_EPS = 1e-5

# ----------------------------- model config ---------------------------------
E, N, RANK, MID = 4, 4, 4, 32          # EEG_channel, NIRS_channel, rank, middle_num
B = 2
L_EEG, L_NIRS = 128, 32

# original (Cin, Cout, kernel, stride) per ReLUConvBn layer (PyTorch view)
EEG_CFG = [(E, 2 * E, 9, 4), (2 * E, 2 * E, 3, 1), (2 * E, 2 * E, 3, 1),
           (2 * E, 4 * E, 9, 4), (4 * E, 4 * E, 3, 1), (4 * E, 4 * E, 3, 1)]
NIRS_CFG = [(N, 2 * N, 5, 2), (2 * N, 2 * N, 3, 1), (2 * N, 2 * N, 3, 1),
            (2 * N, 4 * N, 5, 1), (4 * N, 4 * N, 3, 1), (4 * N, 4 * N, 3, 1)]

# in-kernel layer configs (cin, cout, k) AFTER space-to-depth on layer 1 and
# after merging oxy/deoxy NIRS branches (block-diagonal weights, channels x2)
EEG_LAYERS = [(4 * E, 2 * E, 3), (2 * E, 2 * E, 3), (2 * E, 2 * E, 3),
              (2 * E, 4 * E, 9), (4 * E, 4 * E, 3), (4 * E, 4 * E, 3)]
NIRS_LAYERS = [(4 * N, 4 * N, 3), (4 * N, 4 * N, 3), (4 * N, 4 * N, 3),
               (4 * N, 8 * N, 5), (8 * N, 8 * N, 3), (8 * N, 8 * N, 3)]


# --------------------------- in-kernel building blocks ------------------------
def _run_branch(x, w_ref, b_ref, layers, sels):
    """Run one packed conv branch entirely in vregs.

    x      : (C0, nb*S) activations, batch segments side by side along lanes at a
             fixed stride; only the leading lanes of each segment are valid, the
             trailing lanes carry finite don't-care values that are discarded by
             the selection matmuls.
    w_ref  : packed folded weights; layer l occupies rows [sum cout_<l, +cout_l),
             cols [0, k_l*cin_l)  (row offsets are multiples of 8).
    b_ref  : packed folded biases, same row layout, shape (rows, 1).
    layers : static list of (cin, cout, k)  (stride-1 after space-to-depth).
    sels   : {layer_idx: (lanes_in, lanes_out)} selection matrices applied right
             after the conv dot (stride decimation / adaptive average pool).
    """
    row = 0
    for li, (cin, cout, k) in enumerate(layers):
        xr = jnp.maximum(x, 0.0)                         # ReLU (ReLU->Conv->BN order)
        wout = xr.shape[1] - k + 1
        # im2col: K lane-shifted taps stacked along the contraction (sublane) dim
        taps = [xr[:, kk:kk + wout] for kk in range(k)]
        patches = jnp.concatenate(taps, axis=0) if k > 1 else taps[0]
        w = w_ref[row:row + cout, 0:k * cin]             # (Cout, K*Cin), aligned rows
        y = jnp.dot(w, patches, preferred_element_type=jnp.float32)
        if li in sels:                                   # decimation / pooling matmul
            y = jnp.dot(y, sels[li], preferred_element_type=jnp.float32)
        x = y + b_ref[row:row + cout, :]                 # folded BatchNorm bias
        row += cout
    return x


def _head(feat, wcoreT, w_out_b, w_lin, b_lin):
    """Tensor-fusion head, features-in-sublanes / batch-in-lanes orientation."""
    # einsum('bc,rco->bro') with w_core reshaped to (rank*middle, C_total)
    zf = jnp.dot(wcoreT, feat, preferred_element_type=jnp.float32)    # (R*M, nb)
    # einsum('bro'*6, 'r' -> 'bo')  ==  sum_r zf_r**6 * w_out[r]
    y2 = zf * zf
    t = (y2 * y2 * y2) * w_out_b                                      # (R*M, nb)
    z = t[0:MID, :]
    for r in range(1, RANK):
        z = z + t[r * MID:(r + 1) * MID, :]                           # (M, nb)
    # F.normalize(p=2, dim=1), eps=1e-12; approx reciprocal -> EUP slot (free)
    nrm = jnp.sqrt(jnp.sum(z * z, axis=0, keepdims=True))             # (1, nb)
    zn = z * pl.reciprocal(jnp.maximum(nrm, 1e-12), approx=True)
    # Tanh -> Linear(middle, 2) -> Softmax over classes (sublane axis)
    h = jnp.tanh(zn)
    logits = jnp.dot(w_lin, h, preferred_element_type=jnp.float32) + b_lin   # (2, nb)
    mx = jnp.max(logits, axis=0, keepdims=True)
    e = jnp.exp(logits - mx)
    return e / jnp.sum(e, axis=0, keepdims=True)        # exact div keeps sum == 1


# ------------------------------ fused kernel ----------------------------------
def _fused_kernel(eeg_ref, nirs_ref, we_ref, be_ref, wn_ref, bn_ref,
                  sel_eeg4_ref, pool_eeg_ref, pool_nirs_ref,
                  wcoreT_ref, woutb_ref, wlin_ref, blin_ref, o_ref):
    eeg_pool = _run_branch(eeg_ref[...], we_ref, be_ref, EEG_LAYERS,
                           {3: sel_eeg4_ref[...], 5: pool_eeg_ref[...]})   # (16, nb)
    nirs_pool = _run_branch(nirs_ref[...], wn_ref, bn_ref, NIRS_LAYERS,
                            {5: pool_nirs_ref[...]})                       # (32, nb)
    feat = jnp.concatenate([eeg_pool, nirs_pool], axis=0)   # (48, nb): [eeg, oxy, deoxy]
    o_ref[...] = _head(feat, wcoreT_ref[...], woutb_ref[...],
                       wlin_ref[...], blin_ref[...])


# ------------------------ wrapper-side layout helpers --------------------------
def _space_to_depth(x, s):            # (B, C, L) -> (B, C*s, L//s); commutes with ReLU
    b, c, l = x.shape
    return x.reshape(b, c, l // s, s).transpose(0, 1, 3, 2).reshape(b, c * s, l // s)


def _batch_to_lanes(x):               # (B, C, L) -> (C, B*L): batch segments on lanes
    b, c, l = x.shape
    return jnp.transpose(x, (1, 0, 2)).reshape(c, b * l)


def _decim_sel(nb, in_width, in_stride, step, n_keep, out_stride):
    """0/1 matrix: column b*out_stride+l picks input lane b*in_stride+step*l."""
    r = jnp.arange(in_width)[:, None]
    c = jnp.arange(nb * out_stride)[None, :]
    rb, rl = r // in_stride, r % in_stride
    cb, cl = c // out_stride, c % out_stride
    return ((rb == cb) & (cl < n_keep) & (rl == cl * step)).astype(jnp.float32)


def _pool_sel(nb, in_width, in_stride, n_avg):
    """Column b averages input lanes b*in_stride .. b*in_stride+n_avg-1."""
    r = jnp.arange(in_width)[:, None]
    c = jnp.arange(nb)[None, :]
    rb, rl = r // in_stride, r % in_stride
    return jnp.where((rb == c) & (rl < n_avg), 1.0 / n_avg, 0.0).astype(jnp.float32)


# ------------------------------- forward --------------------------------------
@jax.jit
def pf_cnn_forward(prepped, eeg_x, nirs_oxy_x, nirs_deoxy_x):
    nb = eeg_x.shape[0]
    l_e = eeg_x.shape[2] // 4          # per-batch EEG length after space-to-depth (=32)
    l_n = nirs_oxy_x.shape[2] // 2     # per-batch NIRS length after space-to-depth (=16)

    # stride-4 / stride-2 first convs become stride-1, 3-tap convs via space-to-depth;
    # batch goes to the lane dim, oxy/deoxy are merged along the channel (sublane) dim.
    eeg_in = _batch_to_lanes(_space_to_depth(eeg_x, 4))                      # (16, nb*32)
    nirs_in = _batch_to_lanes(jnp.concatenate(
        [_space_to_depth(nirs_oxy_x, 2), _space_to_depth(nirs_deoxy_x, 2)],
        axis=1))                                                             # (16, nb*16)

    # precomputed selection matrices (constant-folded by XLA, tiny)
    n4 = (l_e - 6 - 9) // 4 + 1                                  # EEG layer-4 len (=5)
    sel_eeg4 = _decim_sel(nb, nb * l_e - 14, l_e, 4, n4, n4)     # stride-4 decimation
    pool_eeg = _pool_sel(nb, nb * n4 - 4, n4, n4 - 4)            # AdaptiveAvgPool1d(1)
    pool_nirs = _pool_sel(nb, nb * l_n - 14, l_n, l_n - 14)      # AdaptiveAvgPool1d(1)

    # Single fused invocation; all operands (<1 MiB) resident in VMEM.
    # TODO(synk): for large batch add a batch grid with dimension_semantics=
    # ("parallel",) so v7x's two TensorCores split the work; at B=2 single-shot wins.
    out_t = pl.pallas_call(
        _fused_kernel,
        out_shape=jax.ShapeDtypeStruct((2, nb), jnp.float32),
    )(eeg_in, nirs_in,
      prepped["w_eeg"], prepped["b_eeg"], prepped["w_nirs"], prepped["b_nirs"],
      sel_eeg4, pool_eeg, pool_nirs,
      prepped["wcoreT"], prepped["w_out_b"], prepped["w_lin"], prepped["b_lin"])
    return out_t.T                                               # (nb, 2) probabilities


# --------------------- parameter prep (BN fold + packing) ---------------------
def _fold_bn(p):
    s = p["gamma"] / jnp.sqrt(p["var"] + BN_EPS)
    return p["w"] * s[:, None, None], p["beta"] - p["mean"] * s


def _s2d_weight(wf, s):
    """Re-express a stride-s conv weight as a stride-1 conv on space-to-depth input."""
    cout, cin, k = wf.shape
    kt = -(-k // s)
    wp = jnp.pad(wf, ((0, 0), (0, 0), (0, kt * s - k)))
    # w_new[co, ci*s + p, t] = w[co, ci, t*s + p]
    return wp.reshape(cout, cin, kt, s).transpose(0, 1, 3, 2).reshape(cout, cin * s, kt)


def _block_diag_cin(wa, wb):
    """Merge two branches with identical topology into block-diag (2Cout, 2Cin, K)."""
    z = jnp.zeros_like(wa)
    return jnp.concatenate([jnp.concatenate([wa, z], axis=1),
                            jnp.concatenate([z, wb], axis=1)], axis=0)


def _w2mat(wf):
    """(Cout, Cin, K) -> (Cout, K*Cin), matching the in-kernel tap-stacked patches."""
    cout, cin, k = wf.shape
    return jnp.transpose(wf, (0, 2, 1)).reshape(cout, k * cin)


def _pack_blob(mats, biases):
    cols = max(m.shape[1] for m in mats)
    w = jnp.concatenate([jnp.pad(m, ((0, 0), (0, cols - m.shape[1]))) for m in mats],
                        axis=0)
    b = jnp.concatenate(biases, axis=0)[:, None]
    return w, b


def prepare_params(params):
    """Fold eval-mode BN, space-to-depth layer-1 weights, merge NIRS branches, pack."""
    eeg_mats, eeg_bs = [], []
    for li, p in enumerate(params["eeg"]):
        wf, bf = _fold_bn(p)
        if li == 0:
            wf = _s2d_weight(wf, 4)
        eeg_mats.append(_w2mat(wf))
        eeg_bs.append(bf)
    w_eeg, b_eeg = _pack_blob(eeg_mats, eeg_bs)          # (72, 72), (72, 1)

    nirs_mats, nirs_bs = [], []
    for li, (po, pd) in enumerate(zip(params["oxy"], params["deoxy"])):
        wo, bo = _fold_bn(po)
        wd, bd = _fold_bn(pd)
        if li == 0:
            wo, wd = _s2d_weight(wo, 2), _s2d_weight(wd, 2)
        nirs_mats.append(_w2mat(_block_diag_cin(wo, wd)))
        nirs_bs.append(jnp.concatenate([bo, bd], axis=0))
    w_nirs, b_nirs = _pack_blob(nirs_mats, nirs_bs)      # (144, 96), (144, 1)

    wcore = params["w_core"]                             # (R, C_total, M)
    wcoreT = jnp.transpose(wcore, (0, 2, 1)).reshape(RANK * MID, wcore.shape[1])
    w_out_b = jnp.repeat(params["w_out"], MID)[:, None]  # (R*M, 1)
    return dict(w_eeg=w_eeg, b_eeg=b_eeg, w_nirs=w_nirs, b_nirs=b_nirs,
                wcoreT=wcoreT, w_out_b=w_out_b,
                w_lin=params["w_lin"], b_lin=params["b_lin"][:, None])


# ----------------------------- parameter init ---------------------------------
def _init_convbn(key, cin, cout, k):
    w = jax.random.normal(key, (cout, cin, k), jnp.float32) / float((cin * k) ** 0.5)
    return dict(w=w,
                gamma=jnp.ones((cout,), jnp.float32),
                beta=jnp.zeros((cout,), jnp.float32),
                mean=jnp.zeros((cout,), jnp.float32),
                var=jnp.ones((cout,), jnp.float32))


def init_params(key):
    n_conv = len(EEG_CFG) + 2 * len(NIRS_CFG)
    keys = jax.random.split(key, n_conv + 4)
    ki = iter(keys)
    eeg = [_init_convbn(next(ki), cin, cout, k) for (cin, cout, k, _) in EEG_CFG]
    oxy = [_init_convbn(next(ki), cin, cout, k) for (cin, cout, k, _) in NIRS_CFG]
    deoxy = [_init_convbn(next(ki), cin, cout, k) for (cin, cout, k, _) in NIRS_CFG]
    c_total = 4 * E + 8 * N
    w_core = jax.random.normal(next(ki), (RANK, c_total, MID), jnp.float32) * (1.0 / (4 * E))
    w_out = jax.random.normal(next(ki), (RANK,), jnp.float32) * (1.0 / RANK)
    lim = 1.0 / (MID ** 0.5)
    w_lin = jax.random.uniform(next(ki), (2, MID), jnp.float32, -lim, lim)   # nn.Linear layout
    b_lin = jax.random.uniform(next(ki), (2,), jnp.float32, -lim, lim)
    return dict(eeg=eeg, oxy=oxy, deoxy=deoxy,
                w_core=w_core, w_out=w_out, w_lin=w_lin, b_lin=b_lin)


# --------------------------------- main ----------------------------------------
if __name__ == "__main__":
    key = jax.random.PRNGKey(0)
    k_in, k_par = jax.random.split(key)
    k_eeg, k_oxy, k_deoxy = jax.random.split(k_in, 3)

    eeg_x = jax.random.normal(k_eeg, (B, E, L_EEG), jnp.float32)          # NCL
    nirs_oxy_x = jax.random.normal(k_oxy, (B, N, L_NIRS), jnp.float32)    # NCL
    nirs_deoxy_x = jax.random.normal(k_deoxy, (B, N, L_NIRS), jnp.float32)

    params = init_params(k_par)
    prepped = prepare_params(params)        # BN folding + packing, done once

    out = pf_cnn_forward(prepped, eeg_x, nirs_oxy_x, nirs_deoxy_x)
    out = jax.block_until_ready(out)
    assert out.shape == (B, 2)
    assert bool(jnp.all(jnp.isfinite(out)))
    # softmax rows must sum to 1
    assert bool(jnp.all(jnp.abs(jnp.sum(out, axis=-1) - 1.0) < 1e-4))
    print("KERNEL_OK")
</pallas_src>

<mosaic_0001>
module attributes {stable_mosaic.version = 11 : i64} {
  func.func @_fused_kernel(%arg0: memref<16x64xf32, #tpu.memory_space<vmem>>, %arg1: memref<16x32xf32, #tpu.memory_space<vmem>>, %arg2: memref<72x72xf32, #tpu.memory_space<vmem>>, %arg3: memref<72x1xf32, #tpu.memory_space<vmem>>, %arg4: memref<144x96xf32, #tpu.memory_space<vmem>>, %arg5: memref<144x1xf32, #tpu.memory_space<vmem>>, %arg6: memref<50x10xf32, #tpu.memory_space<vmem>>, %arg7: memref<6x2xf32, #tpu.memory_space<vmem>>, %arg8: memref<18x2xf32, #tpu.memory_space<vmem>>, %arg9: memref<128x48xf32, #tpu.memory_space<vmem>>, %arg10: memref<128x1xf32, #tpu.memory_space<vmem>>, %arg11: memref<2x32xf32, #tpu.memory_space<vmem>>, %arg12: memref<2x1xf32, #tpu.memory_space<vmem>>, %arg13: memref<2x2xf32, #tpu.memory_space<vmem>>) attributes {dimension_semantics = [], scalar_prefetch = 0 : i64, scratch_operands = 0 : i64, tpu.core_type = #tpu.core_type<tc>} {
    %c0 = arith.constant 0 : index
    %c0_0 = arith.constant 0 : index
    %0 = vector.load %arg0[%c0, %c0_0] : memref<16x64xf32, #tpu.memory_space<vmem>>, vector<16x64xf32>
    %c0_1 = arith.constant 0 : index
    %c0_2 = arith.constant 0 : index
    %1 = vector.load %arg6[%c0_1, %c0_2] : memref<50x10xf32, #tpu.memory_space<vmem>>, vector<50x10xf32>
    %c0_3 = arith.constant 0 : index
    %c0_4 = arith.constant 0 : index
    %2 = vector.load %arg7[%c0_3, %c0_4] : memref<6x2xf32, #tpu.memory_space<vmem>>, vector<6x2xf32>
    %cst = arith.constant 0.000000e+00 : f32
    %3 = vector.broadcast %cst : f32 to vector<16x64xf32>
    %4 = arith.maximumf %0, %3 : vector<16x64xf32>
    %5 = vector.extract_strided_slice %4 {offsets = [0, 0], sizes = [16, 62], strides = [1, 1]} : vector<16x64xf32> to vector<16x62xf32>
    %6 = vector.extract_strided_slice %4 {offsets = [0, 1], sizes = [16, 62], strides = [1, 1]} : vector<16x64xf32> to vector<16x62xf32>
    %7 = vector.extract_strided_slice %4 {offsets = [0, 2], sizes = [16, 62], strides = [1, 1]} : vector<16x64xf32> to vector<16x62xf32>
    %8 = tpu.concatenate %5, %6, %7 in 0 : vector<16x62xf32>, vector<16x62xf32>, vector<16x62xf32> -> vector<48x62xf32>
    %c0_5 = arith.constant 0 : index
    %c0_6 = arith.constant 0 : index
    %9 = vector.load %arg2[%c0_5, %c0_6] : memref<72x72xf32, #tpu.memory_space<vmem>>, vector<8x48xf32>
    %cst_7 = arith.constant dense<0.000000e+00> : vector<8x62xf32>
    %10 = tpu.matmul %9, %8, %cst_7 {dimension_numbers = #tpu.dot_dimension_numbers<[1], [0], [0], [1], [0, 0, 1, 1], [], []>} : vector<8x48xf32>, vector<48x62xf32>, vector<8x62xf32> -> vector<8x62xf32>
    %c0_8 = arith.constant 0 : index
    %c0_9 = arith.constant 0 : index
    %11 = vector.load %arg3[%c0_8, %c0_9] : memref<72x1xf32, #tpu.memory_space<vmem>>, vector<8x1xf32>
    %12 = vector.broadcast %11 : vector<8x1xf32> to vector<8x62xf32>
    %13 = arith.addf %10, %12 : vector<8x62xf32>
    %cst_10 = arith.constant 0.000000e+00 : f32
    %14 = vector.broadcast %cst_10 : f32 to vector<8x62xf32>
    %15 = arith.maximumf %13, %14 : vector<8x62xf32>
    %16 = vector.extract_strided_slice %15 {offsets = [0, 0], sizes = [8, 60], strides = [1, 1]} : vector<8x62xf32> to vector<8x60xf32>
    %17 = vector.extract_strided_slice %15 {offsets = [0, 1], sizes = [8, 60], strides = [1, 1]} : vector<8x62xf32> to vector<8x60xf32>
    %18 = vector.extract_strided_slice %15 {offsets = [0, 2], sizes = [8, 60], strides = [1, 1]} : vector<8x62xf32> to vector<8x60xf32>
    %19 = tpu.concatenate %16, %17, %18 in 0 : vector<8x60xf32>, vector<8x60xf32>, vector<8x60xf32> -> vector<24x60xf32>
    %c8 = arith.constant 8 : index
    %c0_11 = arith.constant 0 : index
    %20 = vector.load %arg2[%c8, %c0_11] : memref<72x72xf32, #tpu.memory_space<vmem>>, vector<8x24xf32>
    %cst_12 = arith.constant dense<0.000000e+00> : vector<8x60xf32>
    %21 = tpu.matmul %20, %19, %cst_12 {dimension_numbers = #tpu.dot_dimension_numbers<[1], [0], [0], [1], [0, 0, 1, 1], [], []>} : vector<8x24xf32>, vector<24x60xf32>, vector<8x60xf32> -> vector<8x60xf32>
    %c8_13 = arith.constant 8 : index
    %c0_14 = arith.constant 0 : index
    %22 = vector.load %arg3[%c8_13, %c0_14] : memref<72x1xf32, #tpu.memory_space<vmem>>, vector<8x1xf32>
    %23 = vector.broadcast %22 : vector<8x1xf32> to vector<8x60xf32>
    %24 = arith.addf %21, %23 : vector<8x60xf32>
    %cst_15 = arith.constant 0.000000e+00 : f32
    %25 = vector.broadcast %cst_15 : f32 to vector<8x60xf32>
    %26 = arith.maximumf %24, %25 : vector<8x60xf32>
    %27 = vector.extract_strided_slice %26 {offsets = [0, 0], sizes = [8, 58], strides = [1, 1]} : vector<8x60xf32> to vector<8x58xf32>
    %28 = vector.extract_strided_slice %26 {offsets = [0, 1], sizes = [8, 58], strides = [1, 1]} : vector<8x60xf32> to vector<8x58xf32>
    %29 = vector.extract_strided_slice %26 {offsets = [0, 2], sizes = [8, 58], strides = [1, 1]} : vector<8x60xf32> to vector<8x58xf32>
    %30 = tpu.concatenate %27, %28, %29 in 0 : vector<8x58xf32>, vector<8x58xf32>, vector<8x58xf32> -> vector<24x58xf32>
    %c16 = arith.constant 16 : index
    %c0_16 = arith.constant 0 : index
    %31 = vector.load %arg2[%c16, %c0_16] : memref<72x72xf32, #tpu.memory_space<vmem>>, vector<8x24xf32>
    %cst_17 = arith.constant dense<0.000000e+00> : vector<8x58xf32>
    %32 = tpu.matmul %31, %30, %cst_17 {dimension_numbers = #tpu.dot_dimension_numbers<[1], [0], [0], [1], [0, 0, 1, 1], [], []>} : vector<8x24xf32>, vector<24x58xf32>, vector<8x58xf32> -> vector<8x58xf32>
    %c16_18 = arith.constant 16 : index
    %c0_19 = arith.constant 0 : index
    %33 = vector.load %arg3[%c16_18, %c0_19] : memref<72x1xf32, #tpu.memory_space<vmem>>, vector<8x1xf32>
    %34 = vector.broadcast %33 : vector<8x1xf32> to vector<8x58xf32>
    %35 = arith.addf %32, %34 : vector<8x58xf32>
    %cst_20 = arith.constant 0.000000e+00 : f32
    %36 = vector.broadcast %cst_20 : f32 to vector<8x58xf32>
    %37 = arith.maximumf %35, %36 : vector<8x58xf32>
    %38 = vector.extract_strided_slice %37 {offsets = [0, 0], sizes = [8, 50], strides = [1, 1]} : vector<8x58xf32> to vector<8x50xf32>
    %39 = vector.extract_strided_slice %37 {offsets = [0, 1], sizes = [8, 50], strides = [1, 1]} : vector<8x58xf32> to vector<8x50xf32>
    %40 = vector.extract_strided_slice %37 {offsets = [0, 2], sizes = [8, 50], strides = [1, 1]} : vector<8x58xf32> to vector<8x50xf32>
    %41 = vector.extract_strided_slice %37 {offsets = [0, 3], sizes = [8, 50], strides = [1, 1]} : vector<8x58xf32> to vector<8x50xf32>
    %42 = vector.extract_strided_slice %37 {offsets = [0, 4], sizes = [8, 50], strides = [1, 1]} : vector<8x58xf32> to vector<8x50xf32>
    %43 = vector.extract_strided_slice %37 {offsets = [0, 5], sizes = [8, 50], strides = [1, 1]} : vector<8x58xf32> to vector<8x50xf32>
    %44 = vector.extract_strided_slice %37 {offsets = [0, 6], sizes = [8, 50], strides = [1, 1]} : vector<8x58xf32> to vector<8x50xf32>
    %45 = vector.extract_strided_slice %37 {offsets = [0, 7], sizes = [8, 50], strides = [1, 1]} : vector<8x58xf32> to vector<8x50xf32>
    %46 = vector.extract_strided_slice %37 {offsets = [0, 8], sizes = [8, 50], strides = [1, 1]} : vector<8x58xf32> to vector<8x50xf32>
    %47 = tpu.concatenate %38, %39, %40, %41, %42, %43, %44, %45, %46 in 0 : vector<8x50xf32>, vector<8x50xf32>, vector<8x50xf32>, vector<8x50xf32>, vector<8x50xf32>, vector<8x50xf32>, vector<8x50xf32>, vector<8x50xf32>, vector<8x50xf32> -> vector<72x50xf32>
    %c24 = arith.constant 24 : index
    %c0_21 = arith.constant 0 : index
    %48 = vector.load %arg2[%c24, %c0_21] : memref<72x72xf32, #tpu.memory_space<vmem>>, vector<16x72xf32>
    %cst_22 = arith.constant dense<0.000000e+00> : vector<16x50xf32>
    %49 = tpu.matmul %48, %47, %cst_22 {dimension_numbers = #tpu.dot_dimension_numbers<[1], [0], [0], [1], [0, 0, 1, 1], [], []>} : vector<16x72xf32>, vector<72x50xf32>, vector<16x50xf32> -> vector<16x50xf32>
    %cst_23 = arith.constant dense<0.000000e+00> : vector<16x10xf32>
    %50 = tpu.matmul %49, %1, %cst_23 {dimension_numbers = #tpu.dot_dimension_numbers<[1], [0], [0], [1], [0, 0, 1, 1], [], []>} : vector<16x50xf32>, vector<50x10xf32>, vector<16x10xf32> -> vector<16x10xf32>
    %c24_24 = arith.constant 24 : index
    %c0_25 = arith.constant 0 : index
    %51 = vector.load %arg3[%c24_24, %c0_25] : memref<72x1xf32, #tpu.memory_space<vmem>>, vector<16x1xf32>
    %52 = vector.broadcast %51 : vector<16x1xf32> to vector<16x10xf32>
    %53 = arith.addf %50, %52 : vector<16x10xf32>
    %cst_26 = arith.constant 0.000000e+00 : f32
    %54 = vector.broadcast %cst_26 : f32 to vector<16x10xf32>
    %55 = arith.maximumf %53, %54 : vector<16x10xf32>
    %56 = vector.extract_strided_slice %55 {offsets = [0, 0], sizes = [16, 8], strides = [1, 1]} : vector<16x10xf32> to vector<16x8xf32>
    %57 = vector.extract_strided_slice %55 {offsets = [0, 1], sizes = [16, 8], strides = [1, 1]} : vector<16x10xf32> to vector<16x8xf32>
    %58 = vector.extract_strided_slice %55 {offsets = [0, 2], sizes = [16, 8], strides = [1, 1]} : vector<16x10xf32> to vector<16x8xf32>
    %59 = tpu.concatenate %56, %57, %58 in 0 : vector<16x8xf32>, vector<16x8xf32>, vector<16x8xf32> -> vector<48x8xf32>
    %c40 = arith.constant 40 : index
    %c0_27 = arith.constant 0 : index
    %60 = vector.load %arg2[%c40, %c0_27] : memref<72x72xf32, #tpu.memory_space<vmem>>, vector<16x48xf32>
    %cst_28 = arith.constant dense<0.000000e+00> : vector<16x8xf32>
    %61 = tpu.matmul %60, %59, %cst_28 {dimension_numbers = #tpu.dot_dimension_numbers<[1], [0], [0], [1], [0, 0, 1, 1], [], []>} : vector<16x48xf32>, vector<48x8xf32>, vector<16x8xf32> -> vector<16x8xf32>
    %c40_29 = arith.constant 40 : index
    %c0_30 = arith.constant 0 : index
    %62 = vector.load %arg3[%c40_29, %c0_30] : memref<72x1xf32, #tpu.memory_space<vmem>>, vector<16x1xf32>
    %63 = vector.broadcast %62 : vector<16x1xf32> to vector<16x8xf32>
    %64 = arith.addf %61, %63 : vector<16x8xf32>
    %cst_31 = arith.constant 0.000000e+00 : f32
    %65 = vector.broadcast %cst_31 : f32 to vector<16x8xf32>
    %66 = arith.maximumf %64, %65 : vector<16x8xf32>
    %67 = vector.extract_strided_slice %66 {offsets = [0, 0], sizes = [16, 6], strides = [1, 1]} : vector<16x8xf32> to vector<16x6xf32>
    %68 = vector.extract_strided_slice %66 {offsets = [0, 1], sizes = [16, 6], strides = [1, 1]} : vector<16x8xf32> to vector<16x6xf32>
    %69 = vector.extract_strided_slice %66 {offsets = [0, 2], sizes = [16, 6], strides = [1, 1]} : vector<16x8xf32> to vector<16x6xf32>
    %70 = tpu.concatenate %67, %68, %69 in 0 : vector<16x6xf32>, vector<16x6xf32>, vector<16x6xf32> -> vector<48x6xf32>
    %c56 = arith.constant 56 : index
    %c0_32 = arith.constant 0 : index
    %71 = vector.load %arg2[%c56, %c0_32] : memref<72x72xf32, #tpu.memory_space<vmem>>, vector<16x48xf32>
    %cst_33 = arith.constant dense<0.000000e+00> : vector<16x6xf32>
    %72 = tpu.matmul %71, %70, %cst_33 {dimension_numbers = #tpu.dot_dimension_numbers<[1], [0], [0], [1], [0, 0, 1, 1], [], []>} : vector<16x48xf32>, vector<48x6xf32>, vector<16x6xf32> -> vector<16x6xf32>
    %cst_34 = arith.constant dense<0.000000e+00> : vector<16x2xf32>
    %73 = tpu.matmul %72, %2, %cst_34 {dimension_numbers = #tpu.dot_dimension_numbers<[1], [0], [0], [1], [0, 0, 1, 1], [], []>} : vector<16x6xf32>, vector<6x2xf32>, vector<16x2xf32> -> vector<16x2xf32>
    %c56_35 = arith.constant 56 : index
    %c0_36 = arith.constant 0 : index
    %74 = vector.load %arg3[%c56_35, %c0_36] : memref<72x1xf32, #tpu.memory_space<vmem>>, vector<16x1xf32>
    %75 = vector.broadcast %74 : vector<16x1xf32> to vector<16x2xf32>
    %76 = arith.addf %73, %75 : vector<16x2xf32>
    %c0_37 = arith.constant 0 : index
    %c0_38 = arith.constant 0 : index
    %77 = vector.load %arg1[%c0_37, %c0_38] : memref<16x32xf32, #tpu.memory_space<vmem>>, vector<16x32xf32>
    %c0_39 = arith.constant 0 : index
    %c0_40 = arith.constant 0 : index
    %78 = vector.load %arg8[%c0_39, %c0_40] : memref<18x2xf32, #tpu.memory_space<vmem>>, vector<18x2xf32>
    %cst_41 = arith.constant 0.000000e+00 : f32
    %79 = vector.broadcast %cst_41 : f32 to vector<16x32xf32>
    %80 = arith.maximumf %77, %79 : vector<16x32xf32>
    %81 = vector.extract_strided_slice %80 {offsets = [0, 0], sizes = [16, 30], strides = [1, 1]} : vector<16x32xf32> to vector<16x30xf32>
    %82 = vector.extract_strided_slice %80 {offsets = [0, 1], sizes = [16, 30], strides = [1, 1]} : vector<16x32xf32> to vector<16x30xf32>
    %83 = vector.extract_strided_slice %80 {offsets = [0, 2], sizes = [16, 30], strides = [1, 1]} : vector<16x32xf32> to vector<16x30xf32>
    %84 = tpu.concatenate %81, %82, %83 in 0 : vector<16x30xf32>, vector<16x30xf32>, vector<16x30xf32> -> vector<48x30xf32>
    %c0_42 = arith.constant 0 : index
    %c0_43 = arith.constant 0 : index
    %85 = vector.load %arg4[%c0_42, %c0_43] : memref<144x96xf32, #tpu.memory_space<vmem>>, vector<16x48xf32>
    %cst_44 = arith.constant dense<0.000000e+00> : vector<16x30xf32>
    %86 = tpu.matmul %85, %84, %cst_44 {dimension_numbers = #tpu.dot_dimension_numbers<[1], [0], [0], [1], [0, 0, 1, 1], [], []>} : vector<16x48xf32>, vector<48x30xf32>, vector<16x30xf32> -> vector<16x30xf32>
    %c0_45 = arith.constant 0 : index
    %c0_46 = arith.constant 0 : index
    %87 = vector.load %arg5[%c0_45, %c0_46] : memref<144x1xf32, #tpu.memory_space<vmem>>, vector<16x1xf32>
    %88 = vector.broadcast %87 : vector<16x1xf32> to vector<16x30xf32>
    %89 = arith.addf %86, %88 : vector<16x30xf32>
    %cst_47 = arith.constant 0.000000e+00 : f32
    %90 = vector.broadcast %cst_47 : f32 to vector<16x30xf32>
    %91 = arith.maximumf %89, %90 : vector<16x30xf32>
    %92 = vector.extract_strided_slice %91 {offsets = [0, 0], sizes = [16, 28], strides = [1, 1]} : vector<16x30xf32> to vector<16x28xf32>
    %93 = vector.extract_strided_slice %91 {offsets = [0, 1], sizes = [16, 28], strides = [1, 1]} : vector<16x30xf32> to vector<16x28xf32>
    %94 = vector.extract_strided_slice %91 {offsets = [0, 2], sizes = [16, 28], strides = [1, 1]} : vector<16x30xf32> to vector<16x28xf32>
    %95 = tpu.concatenate %92, %93, %94 in 0 : vector<16x28xf32>, vector<16x28xf32>, vector<16x28xf32> -> vector<48x28xf32>
    %c16_48 = arith.constant 16 : index
    %c0_49 = arith.constant 0 : index
    %96 = vector.load %arg4[%c16_48, %c0_49] : memref<144x96xf32, #tpu.memory_space<vmem>>, vector<16x48xf32>
    %cst_50 = arith.constant dense<0.000000e+00> : vector<16x28xf32>
    %97 = tpu.matmul %96, %95, %cst_50 {dimension_numbers = #tpu.dot_dimension_numbers<[1], [0], [0], [1], [0, 0, 1, 1], [], []>} : vector<16x48xf32>, vector<48x28xf32>, vector<16x28xf32> -> vector<16x28xf32>
    %c16_51 = arith.constant 16 : index
    %c0_52 = arith.constant 0 : index
    %98 = vector.load %arg5[%c16_51, %c0_52] : memref<144x1xf32, #tpu.memory_space<vmem>>, vector<16x1xf32>
    %99 = vector.broadcast %98 : vector<16x1xf32> to vector<16x28xf32>
    %100 = arith.addf %97, %99 : vector<16x28xf32>
    %cst_53 = arith.constant 0.000000e+00 : f32
    %101 = vector.broadcast %cst_53 : f32 to vector<16x28xf32>
    %102 = arith.maximumf %100, %101 : vector<16x28xf32>
    %103 = vector.extract_strided_slice %102 {offsets = [0, 0], sizes = [16, 26], strides = [1, 1]} : vector<16x28xf32> to vector<16x26xf32>
    %104 = vector.extract_strided_slice %102 {offsets = [0, 1], sizes = [16, 26], strides = [1, 1]} : vector<16x28xf32> to vector<16x26xf32>
    %105 = vector.extract_strided_slice %102 {offsets = [0, 2], sizes = [16, 26], strides = [1, 1]} : vector<16x28xf32> to vector<16x26xf32>
    %106 = tpu.concatenate %103, %104, %105 in 0 : vector<16x26xf32>, vector<16x26xf32>, vector<16x26xf32> -> vector<48x26xf32>
    %c32 = arith.constant 32 : index
    %c0_54 = arith.constant 0 : index
    %107 = vector.load %arg4[%c32, %c0_54] : memref<144x96xf32, #tpu.memory_space<vmem>>, vector<16x48xf32>
    %cst_55 = arith.constant dense<0.000000e+00> : vector<16x26xf32>
    %108 = tpu.matmul %107, %106, %cst_55 {dimension_numbers = #tpu.dot_dimension_numbers<[1], [0], [0], [1], [0, 0, 1, 1], [], []>} : vector<16x48xf32>, vector<48x26xf32>, vector<16x26xf32> -> vector<16x26xf32>
    %c32_56 = arith.constant 32 : index
    %c0_57 = arith.constant 0 : index
    %109 = vector.load %arg5[%c32_56, %c0_57] : memref<144x1xf32, #tpu.memory_space<vmem>>, vector<16x1xf32>
    %110 = vector.broadcast %109 : vector<16x1xf32> to vector<16x26xf32>
    %111 = arith.addf %108, %110 : vector<16x26xf32>
    %cst_58 = arith.constant 0.000000e+00 : f32
    %112 = vector.broadcast %cst_58 : f32 to vector<16x26xf32>
    %113 = arith.maximumf %111, %112 : vector<16x26xf32>
    %114 = vector.extract_strided_slice %113 {offsets = [0, 0], sizes = [16, 22], strides = [1, 1]} : vector<16x26xf32> to vector<16x22xf32>
    %115 = vector.extract_strided_slice %113 {offsets = [0, 1], sizes = [16, 22], strides = [1, 1]} : vector<16x26xf32> to vector<16x22xf32>
    %116 = vector.extract_strided_slice %113 {offsets = [0, 2], sizes = [16, 22], strides = [1, 1]} : vector<16x26xf32> to vector<16x22xf32>
    %117 = vector.extract_strided_slice %113 {offsets = [0, 3], sizes = [16, 22], strides = [1, 1]} : vector<16x26xf32> to vector<16x22xf32>
    %118 = vector.extract_strided_slice %113 {offsets = [0, 4], sizes = [16, 22], strides = [1, 1]} : vector<16x26xf32> to vector<16x22xf32>
    %119 = tpu.concatenate %114, %115, %116, %117, %118 in 0 : vector<16x22xf32>, vector<16x22xf32>, vector<16x22xf32>, vector<16x22xf32>, vector<16x22xf32> -> vector<80x22xf32>
    %c48 = arith.constant 48 : index
    %c0_59 = arith.constant 0 : index
    %120 = vector.load %arg4[%c48, %c0_59] : memref<144x96xf32, #tpu.memory_space<vmem>>, vector<32x80xf32>
    %cst_60 = arith.constant dense<0.000000e+00> : vector<32x22xf32>
    %121 = tpu.matmul %120, %119, %cst_60 {dimension_numbers = #tpu.dot_dimension_numbers<[1], [0], [0], [1], [0, 0, 1, 1], [], []>} : vector<32x80xf32>, vector<80x22xf32>, vector<32x22xf32> -> vector<32x22xf32>
    %c48_61 = arith.constant 48 : index
    %c0_62 = arith.constant 0 : index
    %122 = vector.load %arg5[%c48_61, %c0_62] : memref<144x1xf32, #tpu.memory_space<vmem>>, vector<32x1xf32>
    %123 = vector.broadcast %122 : vector<32x1xf32> to vector<32x22xf32>
    %124 = arith.addf %121, %123 : vector<32x22xf32>
    %cst_63 = arith.constant 0.000000e+00 : f32
    %125 = vector.broadcast %cst_63 : f32 to vector<32x22xf32>
    %126 = arith.maximumf %124, %125 : vector<32x22xf32>
    %127 = vector.extract_strided_slice %126 {offsets = [0, 0], sizes = [32, 20], strides = [1, 1]} : vector<32x22xf32> to vector<32x20xf32>
    %128 = vector.extract_strided_slice %126 {offsets = [0, 1], sizes = [32, 20], strides = [1, 1]} : vector<32x22xf32> to vector<32x20xf32>
    %129 = vector.extract_strided_slice %126 {offsets = [0, 2], sizes = [32, 20], strides = [1, 1]} : vector<32x22xf32> to vector<32x20xf32>
    %130 = tpu.concatenate %127, %128, %129 in 0 : vector<32x20xf32>, vector<32x20xf32>, vector<32x20xf32> -> vector<96x20xf32>
    %c80 = arith.constant 80 : index
    %c0_64 = arith.constant 0 : index
    %131 = vector.load %arg4[%c80, %c0_64] : memref<144x96xf32, #tpu.memory_space<vmem>>, vector<32x96xf32>
    %cst_65 = arith.constant dense<0.000000e+00> : vector<32x20xf32>
    %132 = tpu.matmul %131, %130, %cst_65 {dimension_numbers = #tpu.dot_dimension_numbers<[1], [0], [0], [1], [0, 0, 1, 1], [], []>} : vector<32x96xf32>, vector<96x20xf32>, vector<32x20xf32> -> vector<32x20xf32>
    %c80_66 = arith.constant 80 : index
    %c0_67 = arith.constant 0 : index
    %133 = vector.load %arg5[%c80_66, %c0_67] : memref<144x1xf32, #tpu.memory_space<vmem>>, vector<32x1xf32>
    %134 = vector.broadcast %133 : vector<32x1xf32> to vector<32x20xf32>
    %135 = arith.addf %132, %134 : vector<32x20xf32>
    %cst_68 = arith.constant 0.000000e+00 : f32
    %136 = vector.broadcast %cst_68 : f32 to vector<32x20xf32>
    %137 = arith.maximumf %135, %136 : vector<32x20xf32>
    %138 = vector.extract_strided_slice %137 {offsets = [0, 0], sizes = [32, 18], strides = [1, 1]} : vector<32x20xf32> to vector<32x18xf32>
    %139 = vector.extract_strided_slice %137 {offsets = [0, 1], sizes = [32, 18], strides = [1, 1]} : vector<32x20xf32> to vector<32x18xf32>
    %140 = vector.extract_strided_slice %137 {offsets = [0, 2], sizes = [32, 18], strides = [1, 1]} : vector<32x20xf32> to vector<32x18xf32>
    %141 = tpu.concatenate %138, %139, %140 in 0 : vector<32x18xf32>, vector<32x18xf32>, vector<32x18xf32> -> vector<96x18xf32>
    %c112 = arith.constant 112 : index
    %c0_69 = arith.constant 0 : index
    %142 = vector.load %arg4[%c112, %c0_69] : memref<144x96xf32, #tpu.memory_space<vmem>>, vector<32x96xf32>
    %cst_70 = arith.constant dense<0.000000e+00> : vector<32x18xf32>
    %143 = tpu.matmul %142, %141, %cst_70 {dimension_numbers = #tpu.dot_dimension_numbers<[1], [0], [0], [1], [0, 0, 1, 1], [], []>} : vector<32x96xf32>, vector<96x18xf32>, vector<32x18xf32> -> vector<32x18xf32>
    %cst_71 = arith.constant dense<0.000000e+00> : vector<32x2xf32>
    %144 = tpu.matmul %143, %78, %cst_71 {dimension_numbers = #tpu.dot_dimension_numbers<[1], [0], [0], [1], [0, 0, 1, 1], [], []>} : vector<32x18xf32>, vector<18x2xf32>, vector<32x2xf32> -> vector<32x2xf32>
    %c112_72 = arith.constant 112 : index
    %c0_73 = arith.constant 0 : index
    %145 = vector.load %arg5[%c112_72, %c0_73] : memref<144x1xf32, #tpu.memory_space<vmem>>, vector<32x1xf32>
    %146 = vector.broadcast %145 : vector<32x1xf32> to vector<32x2xf32>
    %147 = arith.addf %144, %146 : vector<32x2xf32>
    %148 = tpu.concatenate %76, %147 in 0 : vector<16x2xf32>, vector<32x2xf32> -> vector<48x2xf32>
    %c0_74 = arith.constant 0 : index
    %c0_75 = arith.constant 0 : index
    %149 = vector.load %arg9[%c0_74, %c0_75] : memref<128x48xf32, #tpu.memory_space<vmem>>, vector<128x48xf32>
    %c0_76 = arith.constant 0 : index
    %c0_77 = arith.constant 0 : index
    %150 = vector.load %arg10[%c0_76, %c0_77] : memref<128x1xf32, #tpu.memory_space<vmem>>, vector<128x1xf32>
    %c0_78 = arith.constant 0 : index
    %c0_79 = arith.constant 0 : index
    %151 = vector.load %arg11[%c0_78, %c0_79] : memref<2x32xf32, #tpu.memory_space<vmem>>, vector<2x32xf32>
    %c0_80 = arith.constant 0 : index
    %c0_81 = arith.constant 0 : index
    %152 = vector.load %arg12[%c0_80, %c0_81] : memref<2x1xf32, #tpu.memory_space<vmem>>, vector<2x1xf32>
    %cst_82 = arith.constant dense<0.000000e+00> : vector<128x2xf32>
    %153 = tpu.matmul %149, %148, %cst_82 {dimension_numbers = #tpu.dot_dimension_numbers<[1], [0], [0], [1], [0, 0, 1, 1], [], []>} : vector<128x48xf32>, vector<48x2xf32>, vector<128x2xf32> -> vector<128x2xf32>
    %154 = arith.mulf %153, %153 : vector<128x2xf32>
    %155 = arith.mulf %154, %154 : vector<128x2xf32>
    %156 = arith.mulf %155, %154 : vector<128x2xf32>
    %157 = vector.broadcast %150 : vector<128x1xf32> to vector<128x2xf32>
    %158 = arith.mulf %156, %157 : vector<128x2xf32>
    %159 = vector.extract_strided_slice %158 {offsets = [0, 0], sizes = [32, 2], strides = [1, 1]} : vector<128x2xf32> to vector<32x2xf32>
    %160 = vector.extract_strided_slice %158 {offsets = [32, 0], sizes = [32, 2], strides = [1, 1]} : vector<128x2xf32> to vector<32x2xf32>
    %161 = arith.addf %159, %160 : vector<32x2xf32>
    %162 = vector.extract_strided_slice %158 {offsets = [64, 0], sizes = [32, 2], strides = [1, 1]} : vector<128x2xf32> to vector<32x2xf32>
    %163 = arith.addf %161, %162 : vector<32x2xf32>
    %164 = vector.extract_strided_slice %158 {offsets = [96, 0], sizes = [32, 2], strides = [1, 1]} : vector<128x2xf32> to vector<32x2xf32>
    %165 = arith.addf %163, %164 : vector<32x2xf32>
    %166 = arith.mulf %165, %165 : vector<32x2xf32>
    %cst_83 = arith.constant dense<0.000000e+00> : vector<2xf32>
    %167 = vector.multi_reduction <add>, %166, %cst_83 [0] : vector<32x2xf32> to vector<2xf32>
    %168 = vector.shape_cast %167 : vector<2xf32> to vector<1x2xf32>
    %169 = math.sqrt %168 : vector<1x2xf32>
    %cst_84 = arith.constant 9.99999996E-13 : f32
    %170 = vector.broadcast %cst_84 : f32 to vector<1x2xf32>
    %171 = arith.maximumf %169, %170 : vector<1x2xf32>
    %172 = tpu.reciprocal %171 {approx = true} : vector<1x2xf32> -> vector<1x2xf32>
    %173 = vector.broadcast %172 : vector<1x2xf32> to vector<32x2xf32>
    %174 = arith.mulf %165, %173 : vector<32x2xf32>
    %175 = math.tanh %174 : vector<32x2xf32>
    %cst_85 = arith.constant dense<0.000000e+00> : vector<2x2xf32>
    %176 = tpu.matmul %151, %175, %cst_85 {dimension_numbers = #tpu.dot_dimension_numbers<[1], [0], [0], [1], [0, 0, 1, 1], [], []>} : vector<2x32xf32>, vector<32x2xf32>, vector<2x2xf32> -> vector<2x2xf32>
    %177 = vector.broadcast %152 : vector<2x1xf32> to vector<2x2xf32>
    %178 = arith.addf %176, %177 : vector<2x2xf32>
    %cst_86 = arith.constant dense<0xFF800000> : vector<2xf32>
    %179 = vector.multi_reduction <maximumf>, %178, %cst_86 [0] : vector<2x2xf32> to vector<2xf32>
    %180 = vector.shape_cast %179 : vector<2xf32> to vector<1x2xf32>
    %181 = vector.broadcast %180 : vector<1x2xf32> to vector<2x2xf32>
    %182 = arith.subf %178, %181 : vector<2x2xf32>
    %183 = math.exp %182 : vector<2x2xf32>
    %cst_87 = arith.constant dense<0.000000e+00> : vector<2xf32>
    %184 = vector.multi_reduction <add>, %183, %cst_87 [0] : vector<2x2xf32> to vector<2xf32>
    %185 = vector.shape_cast %184 : vector<2xf32> to vector<1x2xf32>
    %186 = vector.broadcast %185 : vector<1x2xf32> to vector<2x2xf32>
    %187 = arith.divf %183, %186 : vector<2x2xf32>
    %c0_88 = arith.constant 0 : index
    %c0_89 = arith.constant 0 : index
    %188 = vector.load %arg13[%c0_88, %c0_89] : memref<2x2xf32, #tpu.memory_space<vmem>>, vector<2x2xf32>
    tpu.vector_store %arg13[%c0_88, %c0_89], %187 {strides = array<i32>} : memref<2x2xf32, #tpu.memory_space<vmem>>, vector<2x2xf32>,
    return
  }
}

</mosaic_0001>

<bundles_post_ra>
// kernel: pf_cnn_forward.1
= control target key start
LH: loop header
LB: loop body
LE: loop exit
PB: predicated region body
PF: predicated region fallthrough
CT: control target
= control target key end

     0   :  { %v2812_v2 = vmov 0.0   ;;  %vm2813_vm0 = vmmov 0   ;;  %s2814_s29 = smov 126   ;;  %s2815_s30 = smov 127   ;;  %v2816_v5 = vmov 0   ;;  %vm77_vm1 = vcmask 392192   ;;  %s3377_s0 = inlined_call_operand.vmem [shape: f32[16,64], index: 0, kind: input, shape index: {}]   ;;  %s3378_s3 = inlined_call_operand.vmem [shape: f32[72,1], index: 3, kind: input, shape index: {}]   ;;  %s3379_s2 = inlined_call_operand.vmem [shape: f32[72,72], index: 2, kind: input, shape index: {}]   ;;  %s3380_s6 = inlined_call_operand.vmem [shape: f32[50,10], index: 6, kind: input, shape index: {}]   ;;  %s3381_s1 = inlined_call_operand.vmem [shape: f32[16,32], index: 1, kind: input, shape index: {}]   ;;  %s3382_s5 = inlined_call_operand.vmem [shape: f32[144,1], index: 5, kind: input, shape index: {}]   ;;  %s3383_s4 = inlined_call_operand.vmem [shape: f32[144,96], index: 4, kind: input, shape index: {}]   ;;  %s3384_s7 = inlined_call_operand.vmem [shape: f32[6,2], index: 7, kind: input, shape index: {}]   ;;  %s3385_s10 = inlined_call_operand.vmem [shape: f32[128,1], index: 10, kind: input, shape index: {}]   ;;  %s3386_s12 = inlined_call_operand.vmem [shape: f32[2,1], index: 12, kind: input, shape index: {}]   ;;  %s3387_s8 = inlined_call_operand.vmem [shape: f32[18,2], index: 8, kind: input, shape index: {}]   ;;  %s3388_s9 = inlined_call_operand.vmem [shape: f32[128,48], index: 9, kind: input, shape index: {}]   ;;  %s3389_s11 = inlined_call_operand.vmem [shape: f32[2,32], index: 11, kind: input, shape index: {}]   ;;  %s3390_s13 = inlined_call_operand.vmem [shape: f32[2,2], index: 13, kind: output, shape index: {}]  }
   0x1   :  { %v45_v0 = vld [vmem:[%s3377_s0 + $0x8] sm:$0xff]  ;;  %v44_v1 = vld [vmem:[%s3377_s0] sm:$0xff]  ;;  %2487 = vmatprep.subr.mxu0 %v2812_v2  ;;  %2502 = vmatprep.subr.mxu1 %v2812_v2  ;;  %vm166_vm2 = vcmask 195584   ;;  %v249_v26 = vld [vmem:[%s3378_s3 + $0x10] sm:$0xff]  ;;  %s2817_s25 = smov 121   ;;  %s2818_s26 = smov 120  }
   0x2   :  { %v55_v3 = vmax.f32 %v45_v0, 0.0  ;;  %2499 = vmatprep.mubr.msk.f32.mxu0 %vm2813_vm0, %v2812_v2  ;;  %2508 = vmatprep.mubr.msk.f32.mxu1 %vm2813_vm0, %v2812_v2  ;;  %v54_v4 = vmax.f32 %v44_v1, 0.0  ;;  %v71_v6 = vld [vmem:[%s3378_s3] sm:$0xff]  ;;  %v160_v7 = vld [vmem:[%s3378_s3 + $0x8] sm:$0xff]  ;;  %v248_v29 = vld [vmem:[%s3379_s2 + $0x10] sm:$0xff]  ;;  %vm356_vm3 = vcmask 588800  }
   0x3   :  { %2794 = vset.pattern.permute.xlu0 %v2816_v5  ;;  %2795 = vset.pattern.permute.xlu1 %v2816_v5  ;;  %v70_v12 = vld [vmem:[%s3379_s2] sm:$0xff]  ;;  %v159_v20 = vld [vmem:[%s3379_s2 + $0x8] sm:$0xff]  ;;  %v354_v35 = vld [vmem:[%s3379_s2 + $0x18] sm:$0xff]  ;;  %s2819_s0 = smov 123   ;;  %s2820_s14 = smov 122   ;;  %vm457_vm4 = vcmask 1041408  }
   0x4   :  { %66 = vrot.lane.b32.xlu0 %v55_v3, %s2814_s29  ;;  %60 = vrot.lane.b32.xlu1 %v55_v3, %s2815_s30  ;;  %s2821_s15 = smov 125   ;;  %s2822_s16 = smov 124   ;;  %v438_v36 = vld [vmem:[%s3378_s3 + $0x18] sm:$0xff]  ;;  %v439_v37 = vld [vmem:[%s3378_s3 + $0x20] sm:$0xff]  ;;  %vm450_vm5 = vcmask 408576   ;;  %vm765_vm6 = vcmask 1045504  }
   0x5   :  { %v355_v46 = vld [vmem:[%s3379_s2 + $0x20] sm:$0xff]  ;;  %v52_v47 = vld [vmem:[%s3380_s6 + $0x30] sm:$0x3]  ;;  %v51_v48 = vld [vmem:[%s3380_s6 + $0x28] sm:$0xff]  ;;  %vm758_vm7 = vcmask 48128   ;;  %vm1238_vm8 = vcmask 654336  }
   0x6   :  { %v50_v49 = vld [vmem:[%s3380_s6 + $0x20] sm:$0xff]  ;;  %v49_v50 = vld [vmem:[%s3380_s6 + $0x18] sm:$0xff]  ;;  %v48_v51 = vld [vmem:[%s3380_s6 + $0x10] sm:$0xff]  ;;  %vm1396_vm9 = vcmask 785408   ;;  %vm1651_vm10 = vcmask 146432   ;;  %vm2139_vm11 = vcmask 15360  }
   0x7   :  { %v47_v52 = vld [vmem:[%s3380_s6 + $0x8] sm:$0xff]  ;;  %v46_v53 = vld [vmem:[%s3380_s6] sm:$0xff]  ;;  %v555_v1 = vld [vmem:[%s3378_s3 + $0x30] sm:$0xff]  ;;  %vm2175_vm14 = vcmask 261120   ;;  %vm2249_vm15 = vcmask 9216  }
   0x8   :  { %64 = vrot.lane.b32.xlu0 %v54_v4, %s2814_s29  ;;  %58 = vrot.lane.b32.xlu1 %v54_v4, %s2815_s30  ;;  %v552_v61 = vld [vmem:[%s3379_s2 + $0x28] sm:$0xff] }
   0xc   :  { %74 = vperm.xlu0 %2794, %v71_v6  }
  0x10   :  { %163 = vperm.xlu0 %2794, %v160_v7  }
  0x76   :  { %v67_v8 = vpop.permute.xlu0 %66  ;;  %v61_v9 = vpop.permute.xlu1 %60 }
  0x77   :  { %2488 = vmatpush3.msra.mxu0 %v67_v8  ;;  %v553_v8 = vld [vmem:[%s3379_s2 + $0x30] sm:$0xff] }
  0x78   :  { %2489 = vmatprep.subr.mxu0 %v2812_v2 }
  0x7a   :  { %v65_v10 = vpop.permute.xlu0 %64  ;;  %v59_v11 = vpop.permute.xlu1 %58 }
  0x7b   :  { %2490 = vmatpush3.msra.mxu0 %v65_v10 }
  0x7c   :  { %2491 = vmatprep.subr.mxu0 %v2812_v2 }
  0x7d   :  { %2492 = vmatpush3.msra.mxu0 %v61_v9 }
  0x7e   :  { %2493 = vmatprep.subr.mxu0 %v2812_v2 }
  0x7f   :  { %2494 = vmatpush3.msra.mxu0 %v59_v11 }
  0x80   :  { %2495 = vmatprep.subr.mxu0 %v2812_v2 }
  0x81   :  { %2496 = vmatpush3.msra.mxu0 %v55_v3  ;;  %v554_v3 = vld [vmem:[%s3378_s3 + $0x28] sm:$0xff] }
  0x82   :  { %2497 = vmatprep.subr.mxu0 %v2812_v2 }
  0x83   :  { %2498 = vmatpush3.msra.mxu0 %v54_v4 }
  0x84   :  { %2500 = vmatmul.mubr.msk.f32.vlgmr.msra.gmra.mxu0 %vm77_vm1, %v70_v12 }
  0x87   :  { %v75_v13 = vpop.permute.xlu0 %74 }
  0x8b   :  { %v164_v21 = vpop.permute.xlu0 %163 }
 0x144   :  { %v147_v14 = vpop.f32.mrf.mxu0 }
 0x145   :  { %v148_v15 = vadd.f32 %v147_v14, %v75_v13  ;;  %v663_v14 = vld [vmem:[%s3379_s2 + $0x38] sm:$0xff] }
 0x146   :  { %v2501_v16 = vpop.f32.mrf.mxu0  ;;  %2585 = vmatprep.mubr.msk.f32.mxu0 %vm77_vm1, %v663_v14 }
 0x147   :  { %v151_v17 = vmax.f32 %v148_v15, 0.0 }
 0x149   :  { %156 = vrot.lane.b32.xlu1 %v151_v17, %s2814_s29 }
 0x14d   :  { %153 = vrot.lane.b32.xlu1 %v151_v17, %s2815_s30 }
 0x1bb   :  { %v157_v18 = vpop.permute.xlu1 %156 }
 0x1bc   :  { %2503 = vmatpush3.msra.mxu1 %v157_v18  ;;  %v845_v18 = vld [vmem:[%s3381_s1 + $0x8] sm:$0xff] }
 0x1bd   :  { %2504 = vmatprep.subr.mxu1 %v2812_v2 }
 0x1bf   :  { %v154_v19 = vpop.permute.xlu1 %153 }
 0x1c0   :  { %2505 = vmatpush3.msra.mxu1 %v154_v19  ;;  %v844_v19 = vld [vmem:[%s3381_s1] sm:$0xff] }
 0x1c1   :  { %2506 = vmatprep.subr.mxu1 %v2812_v2 }
 0x1c2   :  { %2507 = vmatpush3.msra.mxu1 %v151_v17 }
 0x1c3   :  { %2509 = vmatmul.mubr.msk.f32.vlgmr.msra.gmra.mxu1 %vm166_vm2, %v159_v20  ;;  %2511 = vmatprep.subr.mxu1 %v2812_v2  ;;  %v850_v20 = vmax.f32 %v845_v18, 0.0  ;;  %v1217_v18 = vld [vmem:[%s3382_s5 + $0x48] sm:$0xff] }
 0x1c4   :  { %2517 = vmatprep.mubr.msk.f32.mxu1 %vm2813_vm0, %v2812_v2 }
 0x283   :  { %v236_v22 = vpop.f32.mrf.mxu1 }
 0x284   :  { %v237_v23 = vadd.f32 %v236_v22, %v164_v21  ;;  %v849_v21 = vmax.f32 %v844_v19, 0.0  ;;  %v868_v22 = vld [vmem:[%s3382_s5 + $0x8] sm:$0xff]  ;;  %v1216_v19 = vld [vmem:[%s3382_s5 + $0x40] sm:$0xff] }
 0x285   :  { %v2510_v24 = vpop.f32.mrf.mxu1 }
 0x286   :  { %v240_v25 = vmax.f32 %v237_v23, 0.0  ;;  %v867_v23 = vld [vmem:[%s3382_s5] sm:$0xff] }
 0x288   :  { %242 = vrot.lane.b32.xlu0 %v240_v25, %s2815_s30  ;;  %245 = vrot.lane.b32.xlu1 %v240_v25, %s2814_s29 }
 0x28c   :  { %252 = vperm.xlu1 %2795, %v249_v26  }
 0x2fa   :  { %v246_v27 = vpop.permute.xlu1 %245  ;;  %v243_v28 = vpop.permute.xlu0 %242 }
 0x2fb   :  { %2512 = vmatpush3.msra.mxu1 %v246_v27 }
 0x2fc   :  { %2513 = vmatprep.subr.mxu1 %v2812_v2 }
 0x2fd   :  { %2514 = vmatpush3.msra.mxu1 %v243_v28 }
 0x2fe   :  { %2515 = vmatprep.subr.mxu1 %v2812_v2 }
 0x2ff   :  { %2516 = vmatpush3.msra.mxu1 %v240_v25 }
 0x300   :  { %2518 = vmatmul.mubr.msk.f32.vlgmr.msra.gmra.mxu1 %vm166_vm2, %v248_v29  ;;  %v664_v29 = vld [vmem:[%s3379_s2 + $0x40] sm:$0xff] }
 0x301   :  { %2538 = vmatprep.mubr.msk.f32.mxu1 %vm356_vm3, %v354_v35  ;;  %v53_v35 = vld [vmem:[%s3384_s7] sm:$0x3f] }
 0x307   :  { %v253_v30 = vpop.permute.xlu1 %252 }
 0x3c0   :  { %v324_v31 = vpop.f32.mrf.mxu1 }
 0x3c1   :  { %v325_v32 = vadd.f32 %v324_v31, %v253_v30  ;;  %v865_v31 = vld [vmem:[%s3383_s4] sm:$0xff] }
 0x3c2   :  { %v2519_v33 = vpop.f32.mrf.mxu1 }
 0x3c3   :  { %v328_v34 = vmax.f32 %v325_v32, 0.0 }
 0x3c5   :  { %348 = vrot.lane.b32.xlu1 %v328_v34, %s2817_s25  ;;  %351 = vrot.lane.b32.xlu0 %v328_v34, %s2818_s26 }
 0x3c9   :  { %342 = vrot.lane.b32.xlu1 %v328_v34, %s2819_s0  ;;  %345 = vrot.lane.b32.xlu0 %v328_v34, %s2820_s14 }
 0x3cd   :  { %336 = vrot.lane.b32.xlu1 %v328_v34, %s2821_s15  ;;  %339 = vrot.lane.b32.xlu0 %v328_v34, %s2822_s16 }
 0x3d1   :  { %330 = vrot.lane.b32.xlu1 %v328_v34, %s2815_s30  ;;  %333 = vrot.lane.b32.xlu0 %v328_v34, %s2814_s29 }
 0x3d5   :  { %442 = vperm.xlu1 %2795, %v438_v36   ;;  %447 = vperm.xlu0 %2794, %v439_v37  }
 0x437   :  { %v349_v38 = vpop.permute.xlu1 %348  ;;  %v352_v39 = vpop.permute.xlu0 %351 }
 0x438   :  { %2520 = vmatprep.subr.mxu1 %v352_v39 }
 0x439   :  { %2521 = vmatpush3.msra.mxu1 %v352_v39 }
 0x43a   :  { %2522 = vmatprep.subr.mxu1 %v349_v38 }
 0x43b   :  { %v343_v40 = vpop.permute.xlu1 %342  ;;  %2523 = vmatpush3.msra.mxu1 %v349_v38  ;;  %v346_v41 = vpop.permute.xlu0 %345 }
 0x43c   :  { %2524 = vmatprep.subr.mxu1 %v346_v41 }
 0x43d   :  { %2525 = vmatpush3.msra.mxu1 %v346_v41 }
 0x43e   :  { %2526 = vmatprep.subr.mxu1 %v343_v40 }
 0x43f   :  { %v337_v42 = vpop.permute.xlu1 %336  ;;  %2527 = vmatpush3.msra.mxu1 %v343_v40  ;;  %v340_v43 = vpop.permute.xlu0 %339 }
 0x440   :  { %2528 = vmatprep.subr.mxu1 %v340_v43 }
 0x441   :  { %2529 = vmatpush3.msra.mxu1 %v340_v43  ;;  %v976_v43 = vld [vmem:[%s3383_s4 + $0x10] sm:$0xff] }
 0x442   :  { %2530 = vmatprep.subr.mxu1 %v337_v42 }
 0x443   :  { %2531 = vmatpush3.msra.mxu1 %v337_v42  ;;  %v334_v44 = vpop.permute.xlu0 %333  ;;  %v331_v45 = vpop.permute.xlu1 %330 }
 0x444   :  { %2532 = vmatprep.subr.mxu1 %v334_v44 }
 0x445   :  { %2533 = vmatpush3.msra.mxu1 %v334_v44 }
 0x446   :  { %2534 = vmatprep.subr.mxu1 %v331_v45 }
 0x447   :  { %2535 = vmatpush3.msra.mxu1 %v331_v45 }
 0x448   :  { %2536 = vmatprep.subr.mxu1 %v328_v34 }
 0x449   :  { %2537 = vmatpush3.msra.mxu1 %v328_v34  ;;  %v866_v34 = vld [vmem:[%s3383_s4 + $0x8] sm:$0xff] }
 0x44a   :  { %2539 = vmatmul.mubr.msk.f32.vlgmr.msra.gmra.mxu1 %vm356_vm3, %v355_v46  ;;  %2541 = vmatprep.subr.msk.mxu1 %vm457_vm4, %v52_v47 }
 0x44b   :  { %2542 = vmatpush3.msk.msra.mxu1 %vm457_vm4, %v52_v47  ;;  %v979_v47 = vld [vmem:[%s3382_s5 + $0x18] sm:$0xff] }
 0x44c   :  { %2543 = vmatprep.subr.mxu1 %v51_v48 }
 0x44d   :  { %2544 = vmatpush3.msra.mxu1 %v51_v48  ;;  %v978_v48 = vld [vmem:[%s3382_s5 + $0x10] sm:$0xff] }
 0x44e   :  { %2545 = vmatprep.subr.mxu1 %v50_v49 }
 0x44f   :  { %2546 = vmatpush3.msra.mxu1 %v50_v49 }
 0x450   :  { %2547 = vmatprep.subr.mxu1 %v49_v50  ;;  %v448_v56 = vpop.permute.xlu0 %447  ;;  %v443_v59 = vpop.permute.xlu1 %442 }
 0x451   :  { %2548 = vmatpush3.msra.mxu1 %v49_v50 }
 0x452   :  { %2549 = vmatprep.subr.mxu1 %v48_v51 }
 0x453   :  { %2550 = vmatpush3.msra.mxu1 %v48_v51 }
 0x454   :  { %2551 = vmatprep.subr.mxu1 %v47_v52 }
 0x455   :  { %2552 = vmatpush3.msra.mxu1 %v47_v52 }
 0x456   :  { %2553 = vmatprep.subr.mxu1 %v46_v53 }
 0x457   :  { %2554 = vmatpush3.msra.mxu1 %v46_v53  ;;  %v977_v53 = vld [vmem:[%s3383_s4 + $0x18] sm:$0xff] }
 0x50a   :  { %v2540_v54 = vpop.f32.mrf.mxu1 }
 0x50c   :  { %v429_v55 = vpop.f32.mrf.mxu1 }
 0x50d   :  { %2555 = vmatprep.mubr.msk.f32.mxu1 %vm450_vm5, %v429_v55 }
 0x50e   :  { %2556 = vmatmul.mubr.msk.f32.vlgmr.msra.gmra.mxu1 %vm450_vm5, %v2540_v54 }
 0x50f   :  { %2570 = vmatprep.mubr.msk.f32.mxu1 %vm77_vm1, %v552_v61  ;;  %v1087_v61 = vld [vmem:[%s3383_s4 + $0x20] sm:$0xff] }
 0x5ce   :  { %v2557_v57 = vpop.f32.mrf.mxu1 }
 0x5cf   :  { %v533_v58 = vadd.f32 %v2557_v57, %v448_v56 }
 0x5d0   :  { %v527_v60 = vpop.f32.mrf.mxu1 }
 0x5d1   :  { %v537_v62 = vmax.f32 %v533_v58, 0.0  ;;  %v528_v63 = vadd.f32 %v527_v60, %v443_v59 }
 0x5d3   :  { %v536_v0 = vmax.f32 %v528_v63, 0.0  ;;  %548 = vrot.lane.b32.xlu0 %v537_v62, %s2814_s29 }
 0x5d5   :  { %546 = vrot.lane.b32.xlu1 %v536_v0, %s2814_s29 }
 0x5d7   :  { %542 = vrot.lane.b32.xlu0 %v537_v62, %s2815_s30 }
 0x5d9   :  { %540 = vrot.lane.b32.xlu1 %v536_v0, %s2815_s30 }
 0x5db   :  { %563 = vperm.xlu0 %2794, %v555_v1   ;;  %v1090_v1 = vld [vmem:[%s3382_s5 + $0x28] sm:$0xff] }
 0x5dd   :  { %558 = vperm.xlu1 %2795, %v554_v3   ;;  %v1089_v3 = vld [vmem:[%s3382_s5 + $0x20] sm:$0xff] }
 0x645   :  { %v549_v4 = vpop.permute.xlu0 %548 }
 0x646   :  { %2558 = vmatprep.subr.mxu1 %v549_v4 }
 0x647   :  { %v547_v5 = vpop.permute.xlu1 %546  ;;  %2559 = vmatpush3.msra.mxu1 %v549_v4 }
 0x648   :  { %2560 = vmatprep.subr.mxu1 %v547_v5 }
 0x649   :  { %2561 = vmatpush3.msra.mxu1 %v547_v5  ;;  %v543_v6 = vpop.permute.xlu0 %542 }
 0x64a   :  { %2562 = vmatprep.subr.mxu1 %v543_v6 }
 0x64b   :  { %v541_v7 = vpop.permute.xlu1 %540  ;;  %2563 = vmatpush3.msra.mxu1 %v543_v6 }
 0x64c   :  { %2564 = vmatprep.subr.mxu1 %v541_v7 }
 0x64d   :  { %2565 = vmatpush3.msra.mxu1 %v541_v7 }
 0x64e   :  { %2566 = vmatprep.subr.mxu1 %v537_v62 }
 0x64f   :  { %2567 = vmatpush3.msra.mxu1 %v537_v62 }
 0x650   :  { %2568 = vmatprep.subr.mxu1 %v536_v0 }
 0x651   :  { %2569 = vmatpush3.msra.mxu1 %v536_v0 }
 0x652   :  { %2571 = vmatmul.mubr.msk.f32.vlgmr.msra.gmra.mxu1 %vm77_vm1, %v553_v8  ;;  %2588 = vmatprep.subr.msk.mxu1 %vm765_vm6, %v53_v35  ;;  %v1088_v8 = vld [vmem:[%s3383_s4 + $0x28] sm:$0xff] }
 0x653   :  { %2589 = vmatpush3.msk.msra.mxu1 %vm765_vm6, %v53_v35 }
 0x656   :  { %v564_v9 = vpop.permute.xlu0 %563 }
 0x658   :  { %v559_v12 = vpop.permute.xlu1 %558 }
 0x712   :  { %v2572_v10 = vpop.f32.mrf.mxu1 }
 0x713   :  { %v644_v11 = vadd.f32 %v2572_v10, %v564_v9 }
 0x714   :  { %v638_v13 = vpop.f32.mrf.mxu1 }
 0x715   :  { %v648_v15 = vmax.f32 %v644_v11, 0.0  ;;  %v639_v16 = vadd.f32 %v638_v13, %v559_v12 }
 0x717   :  { %v647_v17 = vmax.f32 %v639_v16, 0.0  ;;  %659 = vrot.lane.b32.xlu0 %v648_v15, %s2814_s29 }
 0x719   :  { %657 = vrot.lane.b32.xlu1 %v647_v17, %s2814_s29 }
 0x71b   :  { %653 = vrot.lane.b32.xlu0 %v648_v15, %s2815_s30 }
 0x71d   :  { %651 = vrot.lane.b32.xlu1 %v647_v17, %s2815_s30 }
 0x71f   :  { %861 = vrot.lane.b32.xlu0 %v850_v20, %s2814_s29 }
 0x721   :  { %859 = vrot.lane.b32.xlu1 %v849_v21, %s2814_s29 }
 0x723   :  { %855 = vrot.lane.b32.xlu0 %v850_v20, %s2815_s30 }
 0x725   :  { %853 = vrot.lane.b32.xlu1 %v849_v21, %s2815_s30 }
 0x727   :  { %876 = vperm.xlu0 %2794, %v868_v22  }
 0x729   :  { %871 = vperm.xlu1 %2795, %v867_v23  }
 0x789   :  { %v660_v24 = vpop.permute.xlu0 %659 }
 0x78a   :  { %2573 = vmatprep.subr.mxu0 %v660_v24 }
 0x78b   :  { %v658_v25 = vpop.permute.xlu1 %657  ;;  %2574 = vmatpush3.msra.mxu0 %v660_v24 }
 0x78c   :  { %2575 = vmatprep.subr.mxu0 %v658_v25 }
 0x78d   :  { %2576 = vmatpush3.msra.mxu0 %v658_v25  ;;  %v654_v26 = vpop.permute.xlu0 %653 }
 0x78e   :  { %2577 = vmatprep.subr.mxu0 %v654_v26 }
 0x78f   :  { %v652_v27 = vpop.permute.xlu1 %651  ;;  %2578 = vmatpush3.msra.mxu0 %v654_v26 }
 0x790   :  { %2579 = vmatprep.subr.mxu0 %v652_v27 }
 0x791   :  { %2580 = vmatpush3.msra.mxu0 %v652_v27  ;;  %v862_v28 = vpop.permute.xlu0 %861 }
 0x792   :  { %2581 = vmatprep.subr.mxu0 %v648_v15 }
 0x793   :  { %2582 = vmatpush3.msra.mxu0 %v648_v15  ;;  %v860_v30 = vpop.permute.xlu1 %859 }
 0x794   :  { %2583 = vmatprep.subr.mxu0 %v647_v17 }
 0x795   :  { %2584 = vmatpush3.msra.mxu0 %v647_v17  ;;  %v856_v32 = vpop.permute.xlu0 %855  ;;  %v1210_v17 = vld [vmem:[%s3383_s4 + $0x30] sm:$0xff] }
 0x796   :  { %2586 = vmatmul.mubr.msk.f32.vlgmr.msra.gmra.mxu0 %vm77_vm1, %v664_v29  ;;  %2593 = vmatprep.subr.mxu0 %v862_v28 }
 0x797   :  { %2594 = vmatpush3.msra.mxu0 %v862_v28  ;;  %2605 = vmatprep.mubr.msk.f32.mxu0 %vm77_vm1, %v865_v31  ;;  %v854_v33 = vpop.permute.xlu1 %853  ;;  %v1212_v31 = vld [vmem:[%s3383_s4 + $0x40] sm:$0xff] }
 0x798   :  { %2595 = vmatprep.subr.mxu0 %v860_v30 }
 0x799   :  { %2596 = vmatpush3.msra.mxu0 %v860_v30  ;;  %v1211_v30 = vld [vmem:[%s3383_s4 + $0x38] sm:$0xff] }
 0x79a   :  { %2597 = vmatprep.subr.mxu0 %v856_v32 }
 0x79b   :  { %2598 = vmatpush3.msra.mxu0 %v856_v32  ;;  %v1213_v32 = vld [vmem:[%s3383_s4 + $0x48] sm:$0xff] }
 0x79c   :  { %2599 = vmatprep.subr.mxu0 %v854_v33 }
 0x79d   :  { %2600 = vmatpush3.msra.mxu0 %v854_v33 }
 0x79e   :  { %2601 = vmatprep.subr.mxu0 %v850_v20 }
 0x79f   :  { %2602 = vmatpush3.msra.mxu0 %v850_v20  ;;  %v1215_v20 = vld [vmem:[%s3382_s5 + $0x38] sm:$0xff] }
 0x7a0   :  { %2603 = vmatprep.subr.mxu0 %v849_v21 }
 0x7a1   :  { %2604 = vmatpush3.msra.mxu0 %v849_v21  ;;  %v1214_v21 = vld [vmem:[%s3382_s5 + $0x30] sm:$0xff] }
 0x7a2   :  { %2606 = vmatmul.mubr.msk.f32.vlgmr.msra.gmra.mxu0 %vm77_vm1, %v866_v34  ;;  %v877_v38 = vpop.permute.xlu0 %876 }
 0x7a3   :  { %2635 = vmatprep.mubr.msk.f32.mxu0 %vm77_vm1, %v1087_v61 }
 0x7a4   :  { %v872_v41 = vpop.permute.xlu1 %871 }
 0x856   :  { %v2587_v36 = vpop.f32.mrf.mxu0 }
 0x858   :  { %v737_v37 = vpop.f32.mrf.mxu0 }
 0x859   :  { %2590 = vmatprep.mubr.msk.f32.mxu1 %vm758_vm7, %v737_v37 }
 0x85a   :  { %2591 = vmatmul.mubr.msk.f32.vlgmr.msra.gmra.mxu1 %vm758_vm7, %v2587_v36 }
 0x85b   :  { %2620 = vmatprep.mubr.msk.f32.mxu1 %vm77_vm1, %v976_v43 }
 0x862   :  { %v2607_v39 = vpop.f32.mrf.mxu0 }
 0x863   :  { %v957_v40 = vadd.f32 %v2607_v39, %v877_v38 }
 0x864   :  { %v951_v42 = vpop.f32.mrf.mxu0 }
 0x865   :  { %v961_v44 = vmax.f32 %v957_v40, 0.0  ;;  %v952_v45 = vadd.f32 %v951_v42, %v872_v41 }
 0x867   :  { %v960_v46 = vmax.f32 %v952_v45, 0.0  ;;  %972 = vrot.lane.b32.xlu0 %v961_v44, %s2814_s29 }
 0x869   :  { %970 = vrot.lane.b32.xlu1 %v960_v46, %s2814_s29 }
 0x86b   :  { %966 = vrot.lane.b32.xlu0 %v961_v44, %s2815_s30 }
 0x86d   :  { %964 = vrot.lane.b32.xlu1 %v960_v46, %s2815_s30 }
 0x86f   :  { %987 = vperm.xlu0 %2794, %v979_v47  }
 0x871   :  { %982 = vperm.xlu1 %2795, %v978_v48  }
 0x8d9   :  { %v973_v49 = vpop.permute.xlu0 %972 }
 0x8da   :  { %2608 = vmatprep.subr.mxu1 %v973_v49 }
 0x8db   :  { %v971_v50 = vpop.permute.xlu1 %970  ;;  %2609 = vmatpush3.msra.mxu1 %v973_v49  ;;  %v1368_v49 = vld [vmem:[%s3383_s4 + $0x50] sm:$0xff] }
 0x8dc   :  { %2610 = vmatprep.subr.mxu1 %v971_v50 }
 0x8dd   :  { %2611 = vmatpush3.msra.mxu1 %v971_v50  ;;  %v967_v51 = vpop.permute.xlu0 %966  ;;  %v1375_v50 = vld [vmem:[%s3382_s5 + $0x68] sm:$0xff] }
 0x8de   :  { %2612 = vmatprep.subr.mxu1 %v967_v51 }
 0x8df   :  { %v965_v52 = vpop.permute.xlu1 %964  ;;  %2613 = vmatpush3.msra.mxu1 %v967_v51  ;;  %v1374_v51 = vld [vmem:[%s3382_s5 + $0x60] sm:$0xff] }
 0x8e0   :  { %2614 = vmatprep.subr.mxu1 %v965_v52 }
 0x8e1   :  { %2615 = vmatpush3.msra.mxu1 %v965_v52  ;;  %v1373_v52 = vld [vmem:[%s3382_s5 + $0x58] sm:$0xff] }
 0x8e2   :  { %2616 = vmatprep.subr.mxu1 %v961_v44 }
 0x8e3   :  { %2617 = vmatpush3.msra.mxu1 %v961_v44 }
 0x8e4   :  { %2618 = vmatprep.subr.mxu1 %v960_v46 }
 0x8e5   :  { %2619 = vmatpush3.msra.mxu1 %v960_v46 }
 0x8e6   :  { %2621 = vmatmul.mubr.msk.f32.vlgmr.msra.gmra.mxu1 %vm77_vm1, %v977_v53  ;;  %v1372_v53 = vld [vmem:[%s3382_s5 + $0x50] sm:$0xff] }
 0x8e7   :  { %2658 = vmatprep.mubr.msk.f32.mxu1 %vm1238_vm8, %v1210_v17 }
 0x8ea   :  { %v988_v56 = vpop.permute.xlu0 %987 }
 0x8ec   :  { %v983_v59 = vpop.permute.xlu1 %982 }
 0x91a   :  { %v3062_v54 = vpop.f32.mrf.mxu1 }
 0x91c   :  { %v3064_v55 = vpop.f32.mrf.mxu1 }
 0x9a6   :  { %v2622_v57 = vpop.f32.mrf.mxu1 }
 0x9a7   :  { %v1068_v58 = vadd.f32 %v2622_v57, %v988_v56 }
 0x9a8   :  { %v1062_v60 = vpop.f32.mrf.mxu1 }
 0x9a9   :  { %v1072_v62 = vmax.f32 %v1068_v58, 0.0  ;;  %v1063_v63 = vadd.f32 %v1062_v60, %v983_v59 }
 0x9ab   :  { %v1071_v0 = vmax.f32 %v1063_v63, 0.0  ;;  %1083 = vrot.lane.b32.xlu0 %v1072_v62, %s2814_s29 }
 0x9ad   :  { %1081 = vrot.lane.b32.xlu1 %v1071_v0, %s2814_s29 }
 0x9af   :  { %1077 = vrot.lane.b32.xlu0 %v1072_v62, %s2815_s30 }
 0x9b1   :  { %1075 = vrot.lane.b32.xlu1 %v1071_v0, %s2815_s30 }
 0x9b3   :  { %1098 = vperm.xlu0 %2794, %v1090_v1   ;;  %v1370_v1 = vld [vmem:[%s3383_s4 + $0x60] sm:$0xff] }
 0x9b5   :  { %1093 = vperm.xlu1 %2795, %v1089_v3   ;;  %v1371_v3 = vld [vmem:[%s3383_s4 + $0x68] sm:$0xff] }
 0xa1d   :  { %v1084_v4 = vpop.permute.xlu0 %1083 }
 0xa1e   :  { %2623 = vmatprep.subr.mxu0 %v1084_v4 }
 0xa1f   :  { %v1082_v5 = vpop.permute.xlu1 %1081  ;;  %2624 = vmatpush3.msra.mxu0 %v1084_v4 }
 0xa20   :  { %2625 = vmatprep.subr.mxu0 %v1082_v5 }
 0xa21   :  { %2626 = vmatpush3.msra.mxu0 %v1082_v5  ;;  %v1078_v6 = vpop.permute.xlu0 %1077 }
 0xa22   :  { %2627 = vmatprep.subr.mxu0 %v1078_v6 }
 0xa23   :  { %v1076_v7 = vpop.permute.xlu1 %1075  ;;  %2628 = vmatpush3.msra.mxu0 %v1078_v6 }
 0xa24   :  { %2629 = vmatprep.subr.mxu0 %v1076_v7 }
 0xa25   :  { %2630 = vmatpush3.msra.mxu0 %v1076_v7 }
 0xa26   :  { %2631 = vmatprep.subr.mxu0 %v1072_v62 }
 0xa27   :  { %2632 = vmatpush3.msra.mxu0 %v1072_v62 }
 0xa28   :  { %2633 = vmatprep.subr.mxu0 %v1071_v0 }
 0xa29   :  { %2634 = vmatpush3.msra.mxu0 %v1071_v0  ;;  %v1369_v0 = vld [vmem:[%s3383_s4 + $0x58] sm:$0xff] }
 0xa2a   :  { %2636 = vmatmul.mubr.msk.f32.vlgmr.msra.gmra.mxu0 %vm77_vm1, %v1088_v8 }
 0xa2b   :  { %2688 = vmatprep.mubr.msk.f32.mxu0 %vm1396_vm9, %v1368_v49 }
 0xa2e   :  { %v1099_v9 = vpop.permute.xlu0 %1098 }
 0xa30   :  { %v1094_v12 = vpop.permute.xlu1 %1093 }
 0xaea   :  { %v2637_v10 = vpop.f32.mrf.mxu0 }
 0xaeb   :  { %v1179_v11 = vadd.f32 %v2637_v10, %v1099_v9 }
 0xaec   :  { %v1173_v13 = vpop.f32.mrf.mxu0 }
 0xaed   :  { %v1183_v14 = vmax.f32 %v1179_v11, 0.0  ;;  %v1174_v15 = vadd.f32 %v1173_v13, %v1094_v12 }
 0xaef   :  { %v1182_v16 = vmax.f32 %v1174_v15, 0.0  ;;  %1206 = vrot.lane.b32.xlu0 %v1183_v14, %s2822_s16 }
 0xaf1   :  { %1204 = vrot.lane.b32.xlu1 %v1182_v16, %s2822_s16 }
 0xaf3   :  { %1200 = vrot.lane.b32.xlu0 %v1183_v14, %s2821_s15 }
 0xaf5   :  { %1198 = vrot.lane.b32.xlu1 %v1182_v16, %s2821_s15 }
 0xaf7   :  { %1194 = vrot.lane.b32.xlu0 %v1183_v14, %s2814_s29 }
 0xaf9   :  { %1192 = vrot.lane.b32.xlu1 %v1182_v16, %s2814_s29 }
 0xafb   :  { %1188 = vrot.lane.b32.xlu0 %v1183_v14, %s2815_s30 }
 0xafd   :  { %1186 = vrot.lane.b32.xlu1 %v1182_v16, %s2815_s30 }
 0xaff   :  { %1235 = vperm.xlu0 %2794, %v1217_v18  }
 0xb01   :  { %1230 = vperm.xlu1 %2795, %v1216_v19  }
 0xb03   :  { %1225 = vperm.xlu0 %2794, %v1215_v20   ;;  %v1526_v20 = vld [vmem:[%s3383_s4 + $0x70] sm:$0xff] }
 0xb05   :  { %1220 = vperm.xlu1 %2795, %v1214_v21   ;;  %v1630_v21 = vld [vmem:[%s3382_s5 + $0x88] sm:$0xff] }
 0xb61   :  { %v1207_v22 = vpop.permute.xlu0 %1206 }
 0xb62   :  { %2638 = vmatprep.subr.mxu1 %v1207_v22 }
 0xb63   :  { %v1205_v23 = vpop.permute.xlu1 %1204  ;;  %2639 = vmatpush3.msra.mxu1 %v1207_v22  ;;  %v1629_v22 = vld [vmem:[%s3382_s5 + $0x80] sm:$0xff] }
 0xb64   :  { %2640 = vmatprep.subr.mxu1 %v1205_v23 }
 0xb65   :  { %2641 = vmatpush3.msra.mxu1 %v1205_v23  ;;  %v1201_v24 = vpop.permute.xlu0 %1200  ;;  %v1628_v23 = vld [vmem:[%s3382_s5 + $0x78] sm:$0xff] }
 0xb66   :  { %2642 = vmatprep.subr.mxu1 %v1201_v24 }
 0xb67   :  { %v1199_v25 = vpop.permute.xlu1 %1198  ;;  %2643 = vmatpush3.msra.mxu1 %v1201_v24  ;;  %v1627_v24 = vld [vmem:[%s3382_s5 + $0x70] sm:$0xff] }
 0xb68   :  { %2644 = vmatprep.subr.mxu1 %v1199_v25 }
 0xb69   :  { %2645 = vmatpush3.msra.mxu1 %v1199_v25  ;;  %v1195_v26 = vpop.permute.xlu0 %1194  ;;  %v747_v25 = vld [vmem:[%s3378_s3 + $0x40] sm:$0xff] }
 0xb6a   :  { %2646 = vmatprep.subr.mxu1 %v1195_v26 }
 0xb6b   :  { %v1193_v27 = vpop.permute.xlu1 %1192  ;;  %2647 = vmatpush3.msra.mxu1 %v1195_v26  ;;  %v746_v26 = vld [vmem:[%s3378_s3 + $0x38] sm:$0xff] }
 0xb6c   :  { %2648 = vmatprep.subr.mxu1 %v1193_v27 }
 0xb6d   :  { %2649 = vmatpush3.msra.mxu1 %v1193_v27  ;;  %v1189_v28 = vpop.permute.xlu0 %1188  ;;  %v1768_v27 = vld [vmem:[%s3385_s10] sm:$0xff] }
 0xb6e   :  { %2650 = vmatprep.subr.mxu1 %v1189_v28 }
 0xb6f   :  { %v1187_v29 = vpop.permute.xlu1 %1186  ;;  %2651 = vmatpush3.msra.mxu1 %v1189_v28  ;;  %v1769_v28 = vld [vmem:[%s3385_s10 + $0x8] sm:$0xff] }
 0xb70   :  { %2652 = vmatprep.subr.mxu1 %v1187_v29 }
 0xb71   :  { %2653 = vmatpush3.msra.mxu1 %v1187_v29  ;;  %v1772_v29 = vld [vmem:[%s3385_s10 + $0x20] sm:$0xff] }
 0xb72   :  { %2654 = vmatprep.subr.mxu1 %v1183_v14 }
 0xb73   :  { %2655 = vmatpush3.msra.mxu1 %v1183_v14 }
 0xb74   :  { %2656 = vmatprep.subr.mxu1 %v1182_v16 }
 0xb75   :  { %2657 = vmatpush3.msra.mxu1 %v1182_v16 }
 0xb76   :  { %2659 = vmatmul.mubr.msk.f32.vlgmr.msra.gmra.mxu1 %vm1238_vm8, %v1211_v30  ;;  %v1773_v30 = vld [vmem:[%s3385_s10 + $0x28] sm:$0xff] }
 0xb77   :  { %2661 = vmatprep.mubr.msk.f32.mxu1 %vm1238_vm8, %v1212_v31  ;;  %v1770_v31 = vld [vmem:[%s3385_s10 + $0x10] sm:$0xff] }
 0xb7a   :  { %2662 = vmatmul.mubr.msk.f32.gmra.mxu1 %vm1238_vm8, %v1213_v32  ;;  %v1236_v33 = vpop.permute.xlu0 %1235  ;;  %v1774_v32 = vld [vmem:[%s3385_s10 + $0x30] sm:$0xff] }
 0xb7b   :  { %2718 = vmatprep.mubr.msk.f32.mxu1 %vm1396_vm9, %v1526_v20  ;;  %v1757_v20 = vld [vmem:[%s3388_s9 + $0x28] sm:$0xff] }
 0xb7c   :  { %v1231_v35 = vpop.permute.xlu1 %1230 }
 0xb7e   :  { %v1226_v39 = vpop.permute.xlu0 %1225 }
 0xb80   :  { %v1221_v44 = vpop.permute.xlu1 %1220 }
 0xc36   :  { %v2660_v34 = vpop.f32.mrf.mxu1 }
 0xc37   :  { %v1323_v41 = vadd.f32 %v2660_v34, %v1226_v39  ;;  %v1777_v34 = vld [vmem:[%s3385_s10 + $0x48] sm:$0xff] }
 0xc38   :  { %v1317_v36 = vpop.f32.mrf.mxu1  ;;  %v1781_v39 = vld [vmem:[%s3385_s10 + $0x68] sm:$0xff] }
 0xc39   :  { %v1318_v45 = vadd.f32 %v1317_v36, %v1221_v44  ;;  %v1337_v47 = vmax.f32 %v1323_v41, 0.0  ;;  %v1775_v36 = vld [vmem:[%s3385_s10 + $0x38] sm:$0xff]  ;;  %v1782_v41 = vld [vmem:[%s3385_s10 + $0x70] sm:$0xff]  ;;  %v847_v44 = vld [vmem:[%s3387_s8 + $0x8] sm:$0xff] }
 0xc3a   :  { %v2663_v37 = vpop.f32.mrf.mxu1 }
 0xc3b   :  { %v1333_v38 = vadd.f32 %v2663_v37, %v1236_v33  ;;  %v1336_v48 = vmax.f32 %v1318_v45, 0.0  ;;  %v1776_v33 = vld [vmem:[%s3385_s10 + $0x40] sm:$0xff]  ;;  %v1778_v37 = vld [vmem:[%s3385_s10 + $0x50] sm:$0xff] }
 0xc3c   :  { %v1327_v40 = vpop.f32.mrf.mxu1  ;;  %v1785_v45 = vld [vmem:[%s3386_s12] sm:$0x3] }
 0xc3d   :  { %v1339_v42 = vmax.f32 %v1333_v38, 0.0  ;;  %v1328_v43 = vadd.f32 %v1327_v40, %v1231_v35  ;;  %v1771_v35 = vld [vmem:[%s3385_s10 + $0x18] sm:$0xff]  ;;  %v1780_v38 = vld [vmem:[%s3385_s10 + $0x60] sm:$0xff] }
 0xc3e   :  { %v1779_v40 = vld [vmem:[%s3385_s10 + $0x58] sm:$0xff] }
 0xc3f   :  { %v1338_v46 = vmax.f32 %v1328_v43, 0.0  ;;  %1362 = vrot.lane.b32.xlu0 %v1339_v42, %s2814_s29  ;;  %v848_v43 = vld [vmem:[%s3387_s8 + $0x10] sm:$0x3] }
 0xc41   :  { %1360 = vrot.lane.b32.xlu1 %v1338_v46, %s2814_s29 }
 0xc43   :  { %1358 = vrot.lane.b32.xlu0 %v1337_v47, %s2814_s29 }
 0xc45   :  { %1356 = vrot.lane.b32.xlu1 %v1336_v48, %s2814_s29 }
 0xc47   :  { %1350 = vrot.lane.b32.xlu0 %v1339_v42, %s2815_s30 }
 0xc49   :  { %1348 = vrot.lane.b32.xlu1 %v1338_v46, %s2815_s30 }
 0xc4b   :  { %1346 = vrot.lane.b32.xlu0 %v1337_v47, %s2815_s30 }
 0xc4d   :  { %1344 = vrot.lane.b32.xlu1 %v1336_v48, %s2815_s30 }
 0xc4f   :  { %1393 = vperm.xlu0 %2794, %v1375_v50  }
 0xc51   :  { %1388 = vperm.xlu1 %2795, %v1374_v51  }
 0xc53   :  { %1383 = vperm.xlu0 %2794, %v1373_v52  }
 0xc55   :  { %1378 = vperm.xlu1 %2795, %v1372_v53  }
 0xcb1   :  { %v1363_v56 = vpop.permute.xlu0 %1362 }
 0xcb2   :  { %2664 = vmatprep.subr.mxu0 %v1363_v56 }
 0xcb3   :  { %v1361_v57 = vpop.permute.xlu1 %1360  ;;  %2665 = vmatpush3.msra.mxu0 %v1363_v56  ;;  %v1527_v56 = vld [vmem:[%s3383_s4 + $0x78] sm:$0xff] }
 0xcb4   :  { %2666 = vmatprep.subr.mxu0 %v1361_v57 }
 0xcb5   :  { %2667 = vmatpush3.msra.mxu0 %v1361_v57  ;;  %v1359_v58 = vpop.permute.xlu0 %1358  ;;  %v1528_v57 = vld [vmem:[%s3383_s4 + $0x80] sm:$0xff] }
 0xcb6   :  { %2668 = vmatprep.subr.mxu0 %v1359_v58 }
 0xcb7   :  { %v1357_v59 = vpop.permute.xlu1 %1356  ;;  %2669 = vmatpush3.msra.mxu0 %v1359_v58  ;;  %v1529_v58 = vld [vmem:[%s3383_s4 + $0x88] sm:$0xff] }
 0xcb8   :  { %2670 = vmatprep.subr.mxu0 %v1357_v59 }
 0xcb9   :  { %2671 = vmatpush3.msra.mxu0 %v1357_v59  ;;  %v1351_v60 = vpop.permute.xlu0 %1350  ;;  %v846_v59 = vld [vmem:[%s3387_s8] sm:$0xff] }
 0xcba   :  { %2672 = vmatprep.subr.mxu0 %v1351_v60 }
 0xcbb   :  { %v1349_v61 = vpop.permute.xlu1 %1348  ;;  %2673 = vmatpush3.msra.mxu0 %v1351_v60 }
 0xcbc   :  { %2674 = vmatprep.subr.mxu0 %v1349_v61 }
 0xcbd   :  { %2675 = vmatpush3.msra.mxu0 %v1349_v61  ;;  %v1347_v62 = vpop.permute.xlu0 %1346 }
 0xcbe   :  { %2676 = vmatprep.subr.mxu0 %v1347_v62 }
 0xcbf   :  { %v1345_v63 = vpop.permute.xlu1 %1344  ;;  %2677 = vmatpush3.msra.mxu0 %v1347_v62 }
 0xcc0   :  { %2678 = vmatprep.subr.mxu0 %v1345_v63 }
 0xcc1   :  { %2679 = vmatpush3.msra.mxu0 %v1345_v63 }
 0xcc2   :  { %2680 = vmatprep.subr.mxu0 %v1339_v42 }
 0xcc3   :  { %2681 = vmatpush3.msra.mxu0 %v1339_v42  ;;  %v1783_v42 = vld [vmem:[%s3385_s10 + $0x78] sm:$0xff] }
 0xcc4   :  { %2682 = vmatprep.subr.mxu0 %v1338_v46 }
 0xcc5   :  { %2683 = vmatpush3.msra.mxu0 %v1338_v46 }
 0xcc6   :  { %2684 = vmatprep.subr.mxu0 %v1337_v47 }
 0xcc7   :  { %2685 = vmatpush3.msra.mxu0 %v1337_v47 }
 0xcc8   :  { %2686 = vmatprep.subr.mxu0 %v1336_v48 }
 0xcc9   :  { %2687 = vmatpush3.msra.mxu0 %v1336_v48 }
 0xcca   :  { %2689 = vmatmul.mubr.msk.f32.vlgmr.msra.gmra.mxu0 %vm1396_vm9, %v1369_v0  ;;  %v1394_v4 = vpop.permute.xlu0 %1393  ;;  %2724 = vmatprep.subr.msk.mxu0 %vm457_vm4, %v848_v43  ;;  %v1752_v0 = vld [vmem:[%s3388_s9] sm:$0xff] }
 0xccb   :  { %2691 = vmatprep.mubr.msk.f32.mxu0 %vm1396_vm9, %v1370_v1  ;;  %2725 = vmatpush3.msk.msra.mxu0 %vm457_vm4, %v848_v43 }
 0xccc   :  { %v1389_v6 = vpop.permute.xlu1 %1388  ;;  %2726 = vmatprep.subr.mxu0 %v847_v44 }
 0xccd   :  { %2727 = vmatpush3.msra.mxu0 %v847_v44 }
 0xcce   :  { %2692 = vmatmul.mubr.msk.f32.gmra.mxu0 %vm1396_vm9, %v1371_v3  ;;  %v1384_v10 = vpop.permute.xlu0 %1383  ;;  %2728 = vmatprep.subr.mxu0 %v846_v59 }
 0xccf   :  { %2729 = vmatpush3.msra.mxu0 %v846_v59 }
 0xcd0   :  { %v1379_v15 = vpop.permute.xlu1 %1378 }
 0xd8a   :  { %v2690_v5 = vpop.f32.mrf.mxu0 }
 0xd8b   :  { %v1481_v12 = vadd.f32 %v2690_v5, %v1384_v10 }
 0xd8c   :  { %v1475_v7 = vpop.f32.mrf.mxu0 }
 0xd8d   :  { %v1476_v16 = vadd.f32 %v1475_v7, %v1379_v15  ;;  %v3162_v18 = vmax.f32 %v1481_v12, 0.0 }
 0xd8e   :  { %v2693_v8 = vpop.f32.mrf.mxu0 }
 0xd8f   :  { %v1491_v9 = vadd.f32 %v2693_v8, %v1394_v4  ;;  %v3166_v19 = vmax.f32 %v1476_v16, 0.0 }
 0xd90   :  { %v1485_v11 = vpop.f32.mrf.mxu0 }
 0xd91   :  { %v3156_v13 = vmax.f32 %v1491_v9, 0.0  ;;  %v1486_v14 = vadd.f32 %v1485_v11, %v1389_v6 }
 0xd93   :  { %v3158_v17 = vmax.f32 %v1486_v14, 0.0  ;;  %1520 = vrot.lane.b32.xlu0 %v3156_v13, %s2814_s29 }
 0xd95   :  { %1518 = vrot.lane.b32.xlu1 %v3158_v17, %s2814_s29 }
 0xd97   :  { %1516 = vrot.lane.b32.xlu0 %v3162_v18, %s2814_s29 }
 0xd99   :  { %1514 = vrot.lane.b32.xlu1 %v3166_v19, %s2814_s29 }
 0xd9b   :  { %1508 = vrot.lane.b32.xlu0 %v3156_v13, %s2815_s30 }
 0xd9d   :  { %1506 = vrot.lane.b32.xlu1 %v3158_v17, %s2815_s30 }
 0xd9f   :  { %1504 = vrot.lane.b32.xlu0 %v3162_v18, %s2815_s30 }
 0xda1   :  { %1502 = vrot.lane.b32.xlu1 %v3166_v19, %s2815_s30 }
 0xda3   :  { %1648 = vperm.xlu0 %2794, %v1630_v21   ;;  %v1758_v21 = vld [vmem:[%s3388_s9 + $0x30] sm:$0xff] }
 0xda5   :  { %1643 = vperm.xlu1 %2795, %v1629_v22   ;;  %v1759_v22 = vld [vmem:[%s3388_s9 + $0x38] sm:$0xff] }
 0xda7   :  { %1638 = vperm.xlu0 %2794, %v1628_v23   ;;  %v1760_v23 = vld [vmem:[%s3388_s9 + $0x40] sm:$0xff] }
 0xda9   :  { %1633 = vperm.xlu1 %2795, %v1627_v24   ;;  %v1761_v24 = vld [vmem:[%s3388_s9 + $0x48] sm:$0xff] }
 0xdab   :  { %755 = vperm.xlu0 %2794, %v747_v25   ;;  %v1762_v25 = vld [vmem:[%s3388_s9 + $0x50] sm:$0xff] }
 0xdad   :  { %750 = vperm.xlu1 %2795, %v746_v26   ;;  %v1763_v26 = vld [vmem:[%s3388_s9 + $0x58] sm:$0xff] }
 0xdaf   :  { %2029 = vperm.xlu0 %2794, %v1768_v27   ;;  %v1764_v27 = vld [vmem:[%s3388_s9 + $0x60] sm:$0xff] }
 0xdb1   :  { %2034 = vperm.xlu1 %2795, %v1769_v28   ;;  %v1765_v28 = vld [vmem:[%s3388_s9 + $0x68] sm:$0xff] }
 0xdb3   :  { %2049 = vperm.xlu0 %2794, %v1772_v29   ;;  %v1766_v29 = vld [vmem:[%s3388_s9 + $0x70] sm:$0xff] }
 0xdb5   :  { %2054 = vperm.xlu1 %2795, %v1773_v30   ;;  %v1767_v30 = vld [vmem:[%s3388_s9 + $0x78] sm:$0xff] }
 0xdb7   :  { %2039 = vperm.xlu0 %2794, %v1770_v31  }
 0xdb9   :  { %2059 = vperm.xlu1 %2795, %v1774_v32  }
 0xdbb   :  { %2069 = vperm.xlu0 %2794, %v1776_v33  }
 0xdbd   :  { %2074 = vperm.xlu1 %2795, %v1777_v34  }
 0xdbf   :  { %2044 = vperm.xlu0 %2794, %v1771_v35  }
 0xdc1   :  { %2064 = vperm.xlu1 %2795, %v1775_v36  }
 0xdc3   :  { %2079 = vperm.xlu0 %2794, %v1778_v37  }
 0xdc5   :  { %2089 = vperm.xlu1 %2795, %v1780_v38  }
 0xdc7   :  { %2094 = vperm.xlu0 %2794, %v1781_v39  }
 0xdc9   :  { %2084 = vperm.xlu1 %2795, %v1779_v40  }
 0xdcb   :  { %2099 = vperm.xlu0 %2794, %v1782_v41  }
 0xdcd   :  { %2104 = vperm.xlu1 %2795, %v1783_v42  }
 0xdcf   :  { %2172 = vperm.xlu0 %2794, %v1785_v45  }
 0xe05   :  { %v1521_v46 = vpop.permute.xlu0 %1520 }
 0xe06   :  { %2694 = vmatprep.subr.mxu1 %v1521_v46 }
 0xe07   :  { %v1519_v47 = vpop.permute.xlu1 %1518  ;;  %2695 = vmatpush3.msra.mxu1 %v1521_v46 }
 0xe08   :  { %2696 = vmatprep.subr.mxu1 %v1519_v47 }
 0xe09   :  { %2697 = vmatpush3.msra.mxu1 %v1519_v47  ;;  %v1517_v48 = vpop.permute.xlu0 %1516 }
 0xe0a   :  { %2698 = vmatprep.subr.mxu1 %v1517_v48 }
 0xe0b   :  { %v1515_v49 = vpop.permute.xlu1 %1514  ;;  %2699 = vmatpush3.msra.mxu1 %v1517_v48 }
 0xe0c   :  { %2700 = vmatprep.subr.mxu1 %v1515_v49 }
 0xe0d   :  { %2701 = vmatpush3.msra.mxu1 %v1515_v49  ;;  %v1509_v50 = vpop.permute.xlu0 %1508 }
 0xe0e   :  { %2702 = vmatprep.subr.mxu1 %v1509_v50 }
 0xe0f   :  { %v1507_v51 = vpop.permute.xlu1 %1506  ;;  %2703 = vmatpush3.msra.mxu1 %v1509_v50 }
 0xe10   :  { %2704 = vmatprep.subr.mxu1 %v1507_v51 }
 0xe11   :  { %2705 = vmatpush3.msra.mxu1 %v1507_v51  ;;  %v1505_v52 = vpop.permute.xlu0 %1504 }
 0xe12   :  { %2706 = vmatprep.subr.mxu1 %v1505_v52 }
 0xe13   :  { %v1503_v53 = vpop.permute.xlu1 %1502  ;;  %2707 = vmatpush3.msra.mxu1 %v1505_v52 }
 0xe14   :  { %2708 = vmatprep.subr.mxu1 %v1503_v53 }
 0xe15   :  { %2709 = vmatpush3.msra.mxu1 %v1503_v53 }
 0xe16   :  { %2710 = vmatprep.subr.mxu1 %v3156_v13 }
 0xe17   :  { %2711 = vmatpush3.msra.mxu1 %v3156_v13 }
 0xe18   :  { %2712 = vmatprep.subr.mxu1 %v3158_v17 }
 0xe19   :  { %2713 = vmatpush3.msra.mxu1 %v3158_v17 }
 0xe1a   :  { %2714 = vmatprep.subr.mxu1 %v3162_v18 }
 0xe1b   :  { %2715 = vmatpush3.msra.mxu1 %v3162_v18  ;;  %v1753_v18 = vld [vmem:[%s3388_s9 + $0x8] sm:$0xff] }
 0xe1c   :  { %2716 = vmatprep.subr.mxu1 %v3166_v19 }
 0xe1d   :  { %2717 = vmatpush3.msra.mxu1 %v3166_v19  ;;  %v1754_v19 = vld [vmem:[%s3388_s9 + $0x10] sm:$0xff] }
 0xe1e   :  { %2719 = vmatmul.mubr.msk.f32.vlgmr.msra.gmra.mxu1 %vm1396_vm9, %v1527_v56  ;;  %2772 = vmatprep.subr.mxu1 %v2812_v2  ;;  %v1649_v1 = vpop.permute.xlu0 %1648 }
 0xe1f   :  { %2721 = vmatprep.mubr.msk.f32.mxu1 %vm1396_vm9, %v1528_v57 }
 0xe20   :  { %v1644_v3 = vpop.permute.xlu1 %1643 }
 0xe22   :  { %2722 = vmatmul.mubr.msk.f32.gmra.mxu1 %vm1396_vm9, %v1529_v58  ;;  %v1639_v6 = vpop.permute.xlu0 %1638 }
 0xe23   :  { %2780 = vmatprep.mubr.msk.f32.mxu1 %vm2813_vm0, %v2812_v2 }
 0xe24   :  { %v1634_v9 = vpop.permute.xlu1 %1633 }
 0xe26   :  { %v756_v13 = vpop.permute.xlu0 %755 }
 0xe27   :  { %v841_v16 = vadd.f32 %v3062_v54, %v756_v13  ;;  %v1755_v54 = vld [vmem:[%s3388_s9 + $0x18] sm:$0xff] }
 0xe28   :  { %v751_v15 = vpop.permute.xlu1 %750 }
 0xe29   :  { %v836_v17 = vadd.f32 %v3064_v55, %v751_v15  ;;  %v1756_v55 = vld [vmem:[%s3388_s9 + $0x20] sm:$0xff] }
 0xe2a   :  { %v2030_v32 = vpop.permute.xlu0 %2029 }
 0xe2c   :  { %v2035_v31 = vpop.permute.xlu1 %2034 }
 0xe2e   :  { %v3353_v34 = vpop.permute.xlu0 %2049 }
 0xe30   :  { %v2055_v33 = vpop.permute.xlu1 %2054 }
 0xe32   :  { %v3357_v39 = vpop.permute.xlu0 %2039 }
 0xe34   :  { %v3355_v37 = vpop.permute.xlu1 %2059 }
 0xe36   :  { %v3359_v44 = vpop.permute.xlu0 %2069 }
 0xe38   :  { %v2075_v42 = vpop.permute.xlu1 %2074 }
 0xe3a   :  { %v2045_v58 = vpop.permute.xlu0 %2044 }
 0xe3c   :  { %v2065_v50 = vpop.permute.xlu1 %2064 }
 0xede   :  { %v2720_v60 = vpop.f32.mrf.mxu1 }
 0xee0   :  { %v1608_v61 = vpop.f32.mrf.mxu1 }
 0xee1   :  { %2730 = vmatprep.mubr.msk.f32.mxu0 %vm1651_vm10, %v1608_v61 }
 0xee2   :  { %v2723_v62 = vpop.f32.mrf.mxu1  ;;  %2731 = vmatmul.mubr.msk.f32.vlgmr.msra.gmra.mxu0 %vm1651_vm10, %v2720_v60 }
 0xee4   :  { %v1618_v63 = vpop.f32.mrf.mxu1 }
 0xee5   :  { %2733 = vmatprep.mubr.msk.f32.mxu0 %vm1651_vm10, %v1618_v63 }
 0xee6   :  { %2734 = vmatmul.mubr.msk.f32.gmra.mxu0 %vm1651_vm10, %v2723_v62 }
 0xee7   :  { %2748 = vmatprep.mubr.msk.f32.mxu0 %vm77_vm1, %v1752_v0 }
 0xfa2   :  { %v2732_v4 = vpop.f32.mrf.mxu0 }
 0xfa3   :  { %v1739_v12 = vadd.f32 %v2732_v4, %v1639_v6 }
 0xfa4   :  { %v1733_v5 = vpop.f32.mrf.mxu0 }
 0xfa5   :  { %v1734_v14 = vadd.f32 %v1733_v5, %v1634_v9 }
 0xfa6   :  { %v2735_v7 = vpop.f32.mrf.mxu0 }
 0xfa7   :  { %v1749_v8 = vadd.f32 %v2735_v7, %v1649_v1 }
 0xfa8   :  { %v1743_v10 = vpop.f32.mrf.mxu0 }
 0xfa9   :  { %v1744_v11 = vadd.f32 %v1743_v10, %v1644_v3  ;;  %2736 = vmatprep.subr.mxu0 %v1749_v8  ;;  %v2090_v10 = vpop.permute.xlu1 %2089 }
 0xfaa   :  { %2737 = vmatpush3.msra.mxu0 %v1749_v8 }
 0xfab   :  { %2738 = vmatprep.subr.mxu0 %v1744_v11 }
 0xfac   :  { %2739 = vmatpush3.msra.mxu0 %v1744_v11 }
 0xfad   :  { %2740 = vmatprep.subr.mxu0 %v1739_v12 }
 0xfae   :  { %2741 = vmatpush3.msra.mxu0 %v1739_v12 }
 0xfaf   :  { %2742 = vmatprep.subr.mxu0 %v1734_v14 }
 0xfb0   :  { %2743 = vmatpush3.msra.mxu0 %v1734_v14 }
 0xfb1   :  { %2744 = vmatprep.subr.mxu0 %v841_v16 }
 0xfb2   :  { %2745 = vmatpush3.msra.mxu0 %v841_v16 }
 0xfb3   :  { %2746 = vmatprep.subr.mxu0 %v836_v17 }
 0xfb4   :  { %2747 = vmatpush3.msra.mxu0 %v836_v17 }
 0xfb5   :  { %2749 = vmatmul.mubr.msk.f32.vlgmr.msra.gmra.mxu0 %vm77_vm1, %v1753_v18 }
 0xfb6   :  { %2751 = vmatprep.mubr.msk.f32.mxu0 %vm77_vm1, %v1754_v19 }
 0xfb9   :  { %2752 = vmatmul.mubr.msk.f32.gmra.mxu0 %vm77_vm1, %v1755_v54  ;;  %v2080_v54 = vpop.permute.xlu0 %2079 }
 0xfba   :  { %2754 = vmatprep.mubr.msk.f32.mxu0 %vm77_vm1, %v1756_v55 }
 0xfbd   :  { %2755 = vmatmul.mubr.msk.f32.gmra.mxu0 %vm77_vm1, %v1757_v20 }
 0xfbe   :  { %2757 = vmatprep.mubr.msk.f32.mxu0 %vm77_vm1, %v1758_v21 }
 0xfc1   :  { %2758 = vmatmul.mubr.msk.f32.gmra.mxu0 %vm77_vm1, %v1759_v22 }
 0xfc2   :  { %2760 = vmatprep.mubr.msk.f32.mxu0 %vm77_vm1, %v1760_v23 }
 0xfc5   :  { %2761 = vmatmul.mubr.msk.f32.gmra.mxu0 %vm77_vm1, %v1761_v24 }
 0xfc6   :  { %2763 = vmatprep.mubr.msk.f32.mxu0 %vm77_vm1, %v1762_v25 }
 0xfc9   :  { %2764 = vmatmul.mubr.msk.f32.gmra.mxu0 %vm77_vm1, %v1763_v26 }
 0xfca   :  { %2766 = vmatprep.mubr.msk.f32.mxu0 %vm77_vm1, %v1764_v27 }
 0xfcd   :  { %2767 = vmatmul.mubr.msk.f32.gmra.mxu0 %vm77_vm1, %v1765_v28 }
 0xfce   :  { %2769 = vmatprep.mubr.msk.f32.mxu0 %vm77_vm1, %v1766_v29 }
 0xfd1   :  { %2770 = vmatmul.mubr.msk.f32.gmra.mxu0 %vm77_vm1, %v1767_v30 }
0x1075   :  { %v2750_v35 = vpop.f32.mrf.mxu0 }
0x1076   :  { %v1980_v47 = vmul.f32 %v2750_v35, %v2750_v35 }
0x1077   :  { %v1900_v36 = vpop.f32.mrf.mxu0 }
0x1078   :  { %v1979_v49 = vmul.f32 %v1900_v36, %v1900_v36  ;;  %v1996_v59 = vmul.f32 %v1980_v47, %v1980_v47 }
0x1079   :  { %v2753_v38 = vpop.f32.mrf.mxu0 }
0x107a   :  { %v1982_v57 = vmul.f32 %v2753_v38, %v2753_v38  ;;  %v1995_v63 = vmul.f32 %v1979_v49, %v1979_v49  ;;  %v2012_v11 = vmul.f32 %v1996_v59, %v1980_v47 }
0x107b   :  { %v1910_v40 = vpop.f32.mrf.mxu0 }
0x107c   :  { %v1981_v0 = vmul.f32 %v1910_v40, %v1910_v40  ;;  %v1998_v8 = vmul.f32 %v1982_v57, %v1982_v57  ;;  %v2011_v16 = vmul.f32 %v1995_v63, %v1979_v49  ;;  %v2108_v26 = vmul.f32 %v2035_v31, %v2012_v11  ;;  %v2095_v31 = vpop.permute.xlu0 %2094 }
0x107d   :  { %v2756_v41 = vpop.f32.mrf.mxu0 }
0x107e   :  { %v1984_v45 = vmul.f32 %v2756_v41, %v2756_v41  ;;  %v1997_v17 = vmul.f32 %v1981_v0, %v1981_v0  ;;  %v2014_v23 = vmul.f32 %v1998_v8, %v1982_v57  ;;  %v2107_v35 = vmul.f32 %v2030_v32, %v2011_v16  ;;  %v2085_v41 = vpop.permute.xlu1 %2084 }
0x107f   :  { %v1920_v43 = vpop.f32.mrf.mxu0 }
0x1080   :  { %v2000_v51 = vmul.f32 %v1984_v45, %v1984_v45  ;;  %v1983_v52 = vmul.f32 %v1920_v43, %v1920_v43  ;;  %v2013_v36 = vmul.f32 %v1997_v17, %v1981_v0  ;;  %v2100_v11 = vpop.permute.xlu0 %2099 }
0x1081   :  { %v2759_v46 = vpop.f32.mrf.mxu0 }
0x1082   :  { %v1986_v53 = vmul.f32 %v2759_v46, %v2759_v46  ;;  %v2016_v3 = vmul.f32 %v2000_v51, %v1984_v45  ;;  %v1999_v4 = vmul.f32 %v1983_v52, %v1983_v52 }
0x1083   :  { %v1930_v48 = vpop.f32.mrf.mxu0 }
0x1084   :  { %v1985_v60 = vmul.f32 %v1930_v48, %v1930_v48  ;;  %v2002_v5 = vmul.f32 %v1986_v53, %v1986_v53  ;;  %v2112_v55 = vmul.f32 %v2055_v33, %v2016_v3  ;;  %v2015_v20 = vmul.f32 %v1999_v4, %v1983_v52 }
0x1085   :  { %v2762_v56 = vpop.f32.mrf.mxu0  ;;  %v2110_v48 = vmul.f32 %v2045_v58, %v2014_v23 }
0x1086   :  { %v1988_v61 = vmul.f32 %v2762_v56, %v2762_v56  ;;  %v2001_v12 = vmul.f32 %v1985_v60, %v1985_v60  ;;  %v2018_v21 = vmul.f32 %v2002_v5, %v1986_v53  ;;  %v2124_v43 = vadd.f32 %v2112_v55, %v2108_v26  ;;  %v2105_v5 = vpop.permute.xlu1 %2104 }
0x1087   :  { %v1940_v62 = vpop.f32.mrf.mxu0  ;;  %v2111_v45 = vmul.f32 %v3353_v34, %v2015_v20  ;;  %v2109_v34 = vmul.f32 %v3357_v39, %v2013_v36 }
0x1088   :  { %v1987_v1 = vmul.f32 %v1940_v62, %v1940_v62  ;;  %v2004_v6 = vmul.f32 %v1988_v61, %v1988_v61  ;;  %v2017_v27 = vmul.f32 %v2001_v12, %v1985_v60  ;;  %v2114_v33 = vmul.f32 %v2065_v50, %v2018_v21 }
0x1089   :  { %v2765_v7 = vpop.f32.mrf.mxu0  ;;  %v2123_v50 = vadd.f32 %v2111_v45, %v2107_v35 }
0x108a   :  { %v1990_v9 = vmul.f32 %v2765_v7, %v2765_v7  ;;  %v2020_v13 = vmul.f32 %v2004_v6, %v1988_v61  ;;  %v2003_v14 = vmul.f32 %v1987_v1, %v1987_v1  ;;  %v2126_v63 = vadd.f32 %v2114_v33, %v2110_v48 }
0x108b   :  { %v1950_v15 = vpop.f32.mrf.mxu0 }
0x108c   :  { %v2006_v18 = vmul.f32 %v1990_v9, %v1990_v9  ;;  %v1989_v19 = vmul.f32 %v1950_v15, %v1950_v15  ;;  %v2116_v28 = vmul.f32 %v2075_v42, %v2020_v13  ;;  %v2019_v29 = vmul.f32 %v2003_v14, %v1987_v1 }
0x108d   :  { %v2768_v22 = vpop.f32.mrf.mxu0  ;;  %v2113_v42 = vmul.f32 %v3355_v37, %v2017_v27 }
0x108e   :  { %v2005_v24 = vmul.f32 %v1989_v19, %v1989_v19  ;;  %v1992_v25 = vmul.f32 %v2768_v22, %v2768_v22  ;;  %v2022_v38 = vmul.f32 %v2006_v18, %v1990_v9  ;;  %v2128_v53 = vadd.f32 %v2124_v43, %v2116_v28 }
0x108f   :  { %v1960_v30 = vpop.f32.mrf.mxu0  ;;  %v2115_v32 = vmul.f32 %v3359_v44, %v2019_v29  ;;  %v2125_v7 = vadd.f32 %v2113_v42, %v2109_v34  ;;  %v2173_v42 = vpop.permute.xlu0 %2172 }
0x1090   :  { %v2008_v40 = vmul.f32 %v1992_v25, %v1992_v25  ;;  %v1991_v46 = vmul.f32 %v1960_v30, %v1960_v30  ;;  %v2021_v49 = vmul.f32 %v2005_v24, %v1989_v19  ;;  %v2118_v59 = vmul.f32 %v2085_v41, %v2022_v38 }
0x1091   :  { %v2771_v47 = vpop.f32.mrf.mxu0  ;;  %v2127_v37 = vadd.f32 %v2123_v50, %v2115_v32 }
0x1092   :  { %v2024_v51 = vmul.f32 %v2008_v40, %v1992_v25  ;;  %v1994_v52 = vmul.f32 %v2771_v47, %v2771_v47  ;;  %v2007_v56 = vmul.f32 %v1991_v46, %v1991_v46  ;;  %v2117_v0 = vmul.f32 %v2080_v54, %v2021_v49 }
0x1093   :  { %v1970_v57 = vpop.f32.mrf.mxu0  ;;  %v2130_v44 = vadd.f32 %v2126_v63, %v2118_v59 }
0x1094   :  { %v2120_v60 = vmul.f32 %v2095_v31, %v2024_v51  ;;  %v2010_v61 = vmul.f32 %v1994_v52, %v1994_v52  ;;  %v1993_v62 = vmul.f32 %v1970_v57, %v1970_v57  ;;  %v2023_v58 = vmul.f32 %v2007_v56, %v1991_v46 }
0x1095   :  { %v2129_v13 = vadd.f32 %v2125_v7, %v2117_v0 }
0x1096   :  { %v2132_v1 = vadd.f32 %v2128_v53, %v2120_v60  ;;  %v2026_v3 = vmul.f32 %v2010_v61, %v1994_v52  ;;  %v2009_v4 = vmul.f32 %v1993_v62, %v1993_v62  ;;  %v2119_v6 = vmul.f32 %v2090_v10, %v2023_v58  ;;  %v1784_v52 = vld [vmem:[%s3389_s11] sm:$0x3] }
0x1098   :  { %v2122_v8 = vmul.f32 %v2105_v5, %v2026_v3  ;;  %v2025_v9 = vmul.f32 %v2009_v4, %v1993_v62  ;;  %v2131_v12 = vadd.f32 %v2127_v37, %v2119_v6  ;;  %v2136_v14 = vmul.f32 %v2132_v1, %v2132_v1 }
0x109a   :  { %v2134_v15 = vadd.f32 %v2130_v44, %v2122_v8  ;;  %v2121_v39 = vmul.f32 %v2100_v11, %v2025_v9  ;;  %v2135_v16 = vmul.f32 %v2131_v12, %v2131_v12  ;;  %v2141_v19 = vsel %vm2139_vm11, %v2136_v14, 0.0 }
0x109c   :  { %v2133_v17 = vadd.f32 %v2129_v13, %v2121_v39  ;;  %v2140_v18 = vsel %vm2139_vm11, %v2135_v16, 0.0  ;;  %v2138_v54 = vmul.f32 %v2134_v15, %v2134_v15 }
0x109d   :  { %v2142_v20 = vadd.f32 %v2141_v19, %v2140_v18 }
0x109e   :  { %v2137_v55 = vmul.f32 %v2133_v17, %v2133_v17  ;;  %v2145_v22 = vsel %vm2139_vm11, %v2138_v54, 0.0 }
0x10a0   :  { %v2143_v21 = vsel %vm2139_vm11, %v2137_v55, 0.0 }
0x10a1   :  { %v2144_v10 = vadd.f32 %v2143_v21, %v2142_v20 }
0x10a3   :  { %v2146_v23 = vadd.f32 %v2145_v22, %v2144_v10 }
0x10a5   :  { %v2147_v24 = vrot.slane %v2146_v23, 4 }
0x10a7   :  { %v2148_v25 = vadd.f32 %v2147_v24, %v2146_v23 }
0x10a9   :  { %v2149_v26 = vrot.slane %v2148_v25, 2 }
0x10ab   :  { %v2150_v27 = vadd.f32 %v2149_v26, %v2148_v25 }
0x10ad   :  { %v2151_v28 = vrot.slane %v2150_v27, 1 }
0x10af   :  { %v2152_v29 = vadd.f32 %v2151_v28, %v2150_v27 }
0x10b1   :  { %2796 = vrsqrt.f32 %v2152_v29  ;;  %vm2155_vm12 = vcmp.eq.f32.partialorder %v2152_v29, inf  ;;  %v2158_v36 = vand.u32 2147483648, %v2152_v29  ;;  %vm2157_vm13 = vcmp.eq.f32.partialorder %v2152_v29, 0.0 }
0x10be   :  { %v2797_v30 = vpop.eup %2796 }
0x10bf   :  { %v2154_v35 = vmul.f32 %v2797_v30, %v2152_v29 }
0x10c1   :  { %v2156_v38 = vsel %vm2155_vm12, %v2152_v29, %v2154_v35 }
0x10c2   :  { %v2159_v40 = vsel %vm2157_vm13, %v2158_v36, %v2156_v38 }
0x10c3   :  { %v2160_v41 = vmax.f32 %v2159_v40, 1e-12 }
0x10c5   :  { %2798 = vrcp.f32 %v2160_v41 }
0x10d2   :  { %v2799_v43 = vpop.eup %2798 }
0x10d3   :  { %v2165_v45 = vmul.f32 %v2799_v43, %v2134_v15  ;;  %v2164_v33 = vmul.f32 %v2799_v43, %v2133_v17  ;;  %v2163_v46 = vmul.f32 %v2799_v43, %v2132_v1  ;;  %v2162_v47 = vmul.f32 %v2799_v43, %v2131_v12 }
0x10d5   :  { %2800 = vtanh.f32 %v2165_v45 }
0x10d6   :  { %2802 = vtanh.f32 %v2164_v33 }
0x10d7   :  { %2804 = vtanh.f32 %v2163_v46 }
0x10d8   :  { %2806 = vtanh.f32 %v2162_v47 }
0x10e2   :  { %v2801_v48 = vpop.eup %2800 }
0x10e3   :  { %2773 = vmatpush3.msra.mxu1 %v2801_v48  ;;  %v2803_v49 = vpop.eup %2802 }
0x10e4   :  { %2774 = vmatprep.subr.mxu1 %v2812_v2  ;;  %v2805_v51 = vpop.eup %2804 }
0x10e5   :  { %2775 = vmatpush3.msra.mxu1 %v2803_v49  ;;  %v2807_v31 = vpop.eup %2806 }
0x10e6   :  { %2776 = vmatprep.subr.mxu1 %v2812_v2 }
0x10e7   :  { %2777 = vmatpush3.msra.mxu1 %v2805_v51 }
0x10e8   :  { %2778 = vmatprep.subr.mxu1 %v2812_v2 }
0x10e9   :  { %2779 = vmatpush3.msra.mxu1 %v2807_v31 }
0x10ea   :  { %2781 = vmatmul.mubr.msk.f32.vlgmr.msra.gmra.mxu1 %vm2175_vm14, %v1784_v52 }
0x11aa   :  { %v2245_v53 = vpop.f32.mrf.mxu1 }
0x11ab   :  { %v2246_v32 = vadd.f32 %v2245_v53, %v2173_v42 }
0x11ac   :  { %v2782_v56 = vpop.f32.mrf.mxu1 }
0x11ad   :  { %v2250_v57 = vsel %vm2249_vm15, %v2246_v32, -inf }
0x11ae   :  { %v2251_v59 = vrot.slane %v2250_v57, 4 }
0x11b0   :  { %v2252_v60 = vmax.f32 %v2250_v57, %v2251_v59 }
0x11b2   :  { %v2253_v61 = vrot.slane %v2252_v60, 2 }
0x11b4   :  { %v2254_v62 = vmax.f32 %v2252_v60, %v2253_v61 }
0x11b6   :  { %v2255_v34 = vrot.slane %v2254_v62, 1 }
0x11b8   :  { %v2256_v50 = vmax.f32 %v2254_v62, %v2255_v34 }
0x11ba   :  { %v2257_v63 = vsub.f32 %v2246_v32, %v2256_v50 }
0x11bc   :  { %v2258_v58 = vmul.f32 1.442695, %v2257_v63 }
0x11be   :  { %2808 = vpow2.f32 %v2258_v58 }
0x11cb   :  { %v2809_v0 = vpop.eup %2808 }
0x11cc   :  { %v2260_v2 = vsel %vm2249_vm15, %v2809_v0, 0.0 }
0x11cd   :  { %v2261_v1 = vrot.slane %v2260_v2, 4 }
0x11cf   :  { %v2262_v3 = vadd.f32 %v2261_v1, %v2260_v2 }
0x11d1   :  { %v2263_v4 = vrot.slane %v2262_v3, 2 }
0x11d3   :  { %v2264_v5 = vadd.f32 %v2263_v4, %v2262_v3 }
0x11d5   :  { %v2265_v37 = vrot.slane %v2264_v5, 1 }
0x11d7   :  { %v2266_v6 = vadd.f32 %v2265_v37, %v2264_v5 }
0x11d9   :  { %2810 = vrcp.f32 %v2266_v6 }
0x11e6   :  { %v2811_v7 = vpop.eup %2810 }
0x11e7   :  { %v2268_v44 = vmul.f32 %v2811_v7, %v2809_v0 }
0x11e9   :  { %2269 = vst.msk [vmem:[%s3390_s13] sm:$0x3] %vm2249_vm15, %v2268_v44 }

</bundles_post_ra>
